<compile_context>
chip_gen: v5e
topology: v5e:2x2
jax: 0.10.0
libtpu: 0.0.40
codegen_flags: <defaults>
</compile_context>

<pallas_src>
import jax
import jax.numpy as jnp
from jax import lax
from jax.experimental import pallas as pl
from jax.experimental.pallas import tpu as pltpu


VMEM_LIMIT_BYTES = 32 * 1024 * 1024   # explicit scoped-VMEM budget (fits v5e/v6e/v7x)


# ----------------------------------------------------------------------------
# GRU gate math with the input projection gi = x @ W_ih + b_ih precomputed.
# PyTorch nn.GRU gate order (r, z, n); b_hh sits inside the r * (.) term.
# ----------------------------------------------------------------------------
def _gru_gates(gi, h, w_hh, b_hh):
    H = h.shape[-1]
    gh = jnp.dot(h.astype(w_hh.dtype), w_hh,
                 preferred_element_type=jnp.float32) + b_hh            # (B, 3H)
    r = jax.nn.sigmoid(gi[:, :H] + gh[:, :H])
    z = jax.nn.sigmoid(gi[:, H:2 * H] + gh[:, H:2 * H])
    n = jnp.tanh(gi[:, 2 * H:] + r * gh[:, 2 * H:])
    return (1.0 - z) * n + z * h


# ----------------------------------------------------------------------------
# Encoder kernel: bidirectional GRU over the source + tanh(fc) bridge.
# ----------------------------------------------------------------------------
def encoder_kernel(emb_ref,                                    # (S, B, E)  f32
                   wihf_ref, whhf_ref, bihf_ref, bhhf_ref,     # forward GRU
                   wihb_ref, whhb_ref, bihb_ref, bhhb_ref,     # backward GRU
                   fcw_ref, fcb_ref,                           # bridge fc
                   enc_out_ref,                                # (S, B, 2H) f32 out
                   hidden_ref,                                 # (B, DH)    f32 out
                   gif_sc, gib_sc):                            # (S, B, 3H) f32 scratch
    S, B, E = emb_ref.shape
    H = whhf_ref.shape[0]

    # Hoisted input projections: one large (S*B,E)@(E,3H) matmul per direction
    # instead of S tiny per-step matmuls.
    x2d = emb_ref[...].reshape(S * B, E).astype(jnp.bfloat16)
    gif_sc[...] = (jnp.dot(x2d, wihf_ref[...], preferred_element_type=jnp.float32)
                   + bihf_ref[...]).reshape(S, B, 3 * H)
    gib_sc[...] = (jnp.dot(x2d, wihb_ref[...], preferred_element_type=jnp.float32)
                   + bihb_ref[...]).reshape(S, B, 3 * H)

    whhf = whhf_ref[...]; bhhf = bhhf_ref[...]
    whhb = whhb_ref[...]; bhhb = bhhb_ref[...]

    # Forward + backward recurrences interleaved in one loop (ILP across the two
    # independent chains); states written directly into the lane halves of enc_out.
    def body(t, carry):
        h_f, h_b = carry
        s_b = S - 1 - t
        h_f = _gru_gates(gif_sc[t], h_f, whhf, bhhf)
        h_b = _gru_gates(gib_sc[s_b], h_b, whhb, bhhb)
        enc_out_ref[t, :, 0:H] = h_f
        enc_out_ref[s_b, :, H:2 * H] = h_b
        return (h_f, h_b)

    h0 = jnp.zeros((B, H), jnp.float32)
    h_f, h_b = lax.fori_loop(0, S, body, (h0, h0))

    # hidden = tanh(fc([h_fwd ; h_bwd])), weight split to avoid an in-kernel concat.
    fcw = fcw_ref[...]
    hidden_ref[...] = jnp.tanh(
        jnp.dot(h_f.astype(fcw.dtype), fcw[0:H, :],
                preferred_element_type=jnp.float32)
        + jnp.dot(h_b.astype(fcw.dtype), fcw[H:2 * H, :],
                  preferred_element_type=jnp.float32)
        + fcb_ref[...])


# ----------------------------------------------------------------------------
# Decoder kernel: all T-1 attention + GRU + fc_out steps in one invocation.
# ----------------------------------------------------------------------------
def decoder_kernel(tf_ref,                                     # (T,)  int32  SMEM
                   tgt_emb_ref,                                # (T, B, E)    f32
                   enc_out_ref,                                # (S, B, 2EH)  f32
                   hidden0_ref,                                # (B, DH)      f32
                   dec_emb_ref,                                # (V, E)       bf16
                   attn_wh_ref, attn_we_ref, attn_b_ref, attn_v_ref,
                   gru_wih_ref, gru_whh_ref, gru_bih_ref, gru_bhh_ref,
                   fco_w_ref, fco_b_ref,
                   out_ref,                                    # (T-1, B, V)  f32 out
                   eproj_sc):                                  # (S, B, DH)   f32 scratch
    T, B, E = tgt_emb_ref.shape
    S = enc_out_ref.shape[0]
    EH2 = enc_out_ref.shape[2]
    V = dec_emb_ref.shape[0]

    # ---- hoisted, time-invariant attention projection (computed ONCE) ----
    # e_proj = enc_out @ W_e + b, reused at every decode step.
    eproj_sc[...] = (
        jnp.dot(enc_out_ref[...].reshape(S * B, EH2).astype(jnp.bfloat16),
                attn_we_ref[...], preferred_element_type=jnp.float32)
        .reshape(S, B, attn_we_ref.shape[1])
        + attn_b_ref[...])

    attn_v = attn_v_ref[...]                                   # (1, DH) f32, hoisted

    def step(i, carry):
        h, emb_in = carry                                      # (B, DH), (B, E) f32
        t = i + 1

        # ---- attention: softmax_s( v . tanh(W_h h + e_proj) ) ----
        h_proj = jnp.dot(h.astype(jnp.bfloat16), attn_wh_ref[...],
                         preferred_element_type=jnp.float32)   # (B, DH)
        energy = jnp.tanh(h_proj[None, :, :] + eproj_sc[...])  # (S, B, DH)
        scores = jnp.sum(energy * attn_v, axis=-1)             # (S, B)
        scores = scores - jnp.max(scores, axis=0, keepdims=True)
        e = jnp.exp(scores)
        a = e * pl.reciprocal(jnp.sum(e, axis=0, keepdims=True), approx=True)
        # TODO(synk): context reduction kept on VPU; for large S/EH move it to the MXU.
        weighted = jnp.sum(a[:, :, None] * enc_out_ref[...], axis=0)   # (B, 2EH)

        # ---- GRU cell on [embedded ; weighted] ----
        rnn_in = jnp.concatenate([emb_in, weighted], axis=-1).astype(jnp.bfloat16)
        gi = jnp.dot(rnn_in, gru_wih_ref[...],
                     preferred_element_type=jnp.float32) + gru_bih_ref[...]
        h_new = _gru_gates(gi, h, gru_whh_ref[...], gru_bhh_ref[...])  # (B, DH)

        # ---- output projection on [output ; weighted ; embedded] ----
        fc_in = jnp.concatenate([h_new, weighted, emb_in],
                                axis=-1).astype(jnp.bfloat16)
        pred = jnp.dot(fc_in, fco_w_ref[...],
                       preferred_element_type=jnp.float32) + fco_b_ref[...]  # (B, V)
        out_ref[i] = pred

        # ---- next input: teacher forcing (precomputed id-gather emb) vs greedy ----
        top1 = jnp.argmax(pred, axis=1, keepdims=True)          # (B, 1)
        lane = lax.broadcasted_iota(jnp.int32, (B, V), 1)
        top1_oh = (lane == top1).astype(jnp.bfloat16)           # (B, V)
        # TODO(synk): for a large vocab replace this one-hot matmul with an id gather/DMA.
        greedy_emb = jnp.dot(top1_oh, dec_emb_ref[...],
                             preferred_element_type=jnp.float32)    # (B, E)
        tf = (tf_ref[t] == 1).astype(jnp.float32)
        emb_next = tf * tgt_emb_ref[t] + (1.0 - tf) * greedy_emb
        return (h_new, emb_next)

    lax.fori_loop(0, T - 1, step, (hidden0_ref[...], tgt_emb_ref[0]))


# ----------------------------------------------------------------------------
# Wrappers
# ----------------------------------------------------------------------------
def run_encoder(emb_src, p):
    S, B, _ = emb_src.shape
    H = p['enc_whh_f'].shape[0]
    DH = p['enc_fc_w'].shape[1]
    return pl.pallas_call(
        encoder_kernel,
        out_shape=(jax.ShapeDtypeStruct((S, B, 2 * H), jnp.float32),
                   jax.ShapeDtypeStruct((B, DH), jnp.float32)),
        scratch_shapes=[pltpu.VMEM((S, B, 3 * H), jnp.float32),
                        pltpu.VMEM((S, B, 3 * H), jnp.float32)],
        compiler_params=pltpu.CompilerParams(vmem_limit_bytes=VMEM_LIMIT_BYTES),
    )(emb_src,
      p['enc_wih_f'], p['enc_whh_f'], p['enc_bih_f'], p['enc_bhh_f'],
      p['enc_wih_b'], p['enc_whh_b'], p['enc_bih_b'], p['enc_bhh_b'],
      p['enc_fc_w'], p['enc_fc_b'])


def run_decoder(tf_flags, tgt_emb, enc_out, hidden0, p):
    T, B, _ = tgt_emb.shape
    S = enc_out.shape[0]
    DH = hidden0.shape[1]
    V = p['fco_b'].shape[1]
    smem = pl.BlockSpec(memory_space=pltpu.MemorySpace.SMEM)
    vmem = pl.BlockSpec(memory_space=pltpu.MemorySpace.VMEM)
    return pl.pallas_call(
        decoder_kernel,
        out_shape=jax.ShapeDtypeStruct((T - 1, B, V), jnp.float32),
        in_specs=[smem] + [vmem] * 14,
        out_specs=vmem,
        scratch_shapes=[pltpu.VMEM((S, B, DH), jnp.float32)],
        compiler_params=pltpu.CompilerParams(vmem_limit_bytes=VMEM_LIMIT_BYTES),
    )(tf_flags, tgt_emb, enc_out, hidden0,
      p['dec_emb'],
      p['attn_wh'], p['attn_we'], p['attn_b'], p['attn_v'],
      p['dec_wih'], p['dec_whh'], p['dec_bih'], p['dec_bhh'],
      p['fco_w'], p['fco_b'])


def seq2seq_forward(params, src, src_len, tgt, tgt_len, tf_key,
                    teacher_forcing_ratio=0.5):
    # TODO(synk): src_len/tgt_len masking not applied (full-length sequences assumed).
    del src_len, tgt_len
    T, B = tgt.shape
    V = params['fco_b'].shape[1]
    # glue: integer-id embedding gathers (no one-hot machinery anywhere)
    emb_src = jnp.take(params['enc_emb'], src, axis=0).astype(jnp.float32)   # (S,B,E)
    tgt_emb = jnp.take(params['dec_emb'], tgt, axis=0).astype(jnp.float32)   # (T,B,E)
    tf_flags = jax.random.bernoulli(
        tf_key, teacher_forcing_ratio, (T,)).astype(jnp.int32)

    enc_out, hidden0 = run_encoder(emb_src, params)
    dec_out = run_decoder(tf_flags, tgt_emb, enc_out, hidden0, params)
    # outputs[0] stays zero, like the PyTorch module
    return jnp.concatenate([jnp.zeros((1, B, V), jnp.float32), dec_out], axis=0)


# ----------------------------------------------------------------------------
# Deterministic parameter construction (matmul weights bf16, biases f32)
# ----------------------------------------------------------------------------
def make_params(key, in_vocab, out_vocab, enc_emb, dec_emb, enc_hid, dec_hid):
    ks = iter(jax.random.split(key, 32))

    def w(*s):  # matmul operands: bf16 storage, f32 MXU accumulation in-kernel
        return (0.1 * jax.random.normal(next(ks), s, dtype=jnp.float32)
                ).astype(jnp.bfloat16)

    def b(*s):  # biases / VPU-side constants stay f32
        return 0.1 * jax.random.normal(next(ks), s, dtype=jnp.float32)

    return {
        # encoder
        'enc_emb':   w(in_vocab, enc_emb),
        'enc_wih_f': w(enc_emb, 3 * enc_hid), 'enc_whh_f': w(enc_hid, 3 * enc_hid),
        'enc_bih_f': b(1, 3 * enc_hid),       'enc_bhh_f': b(1, 3 * enc_hid),
        'enc_wih_b': w(enc_emb, 3 * enc_hid), 'enc_whh_b': w(enc_hid, 3 * enc_hid),
        'enc_bih_b': b(1, 3 * enc_hid),       'enc_bhh_b': b(1, 3 * enc_hid),
        'enc_fc_w':  w(2 * enc_hid, dec_hid), 'enc_fc_b':  b(1, dec_hid),
        # decoder
        'dec_emb':   w(out_vocab, dec_emb),
        'attn_wh':   w(dec_hid, dec_hid),
        'attn_we':   w(2 * enc_hid, dec_hid),
        'attn_b':    b(1, dec_hid),
        'attn_v':    b(1, dec_hid),
        'dec_wih':   w(dec_emb + 2 * enc_hid, 3 * dec_hid),
        'dec_whh':   w(dec_hid, 3 * dec_hid),
        'dec_bih':   b(1, 3 * dec_hid),
        'dec_bhh':   b(1, 3 * dec_hid),
        'fco_w':     w(dec_hid + 2 * enc_hid + dec_emb, out_vocab),
        'fco_b':     b(1, out_vocab),
    }


if __name__ == "__main__":
    # Small shapes consistent with the module, chosen lane/sublane dense
    # (batch multiple of 8, feature/vocab dims multiples of 128) per the review.
    S, T, B = 8, 8, 8
    IN_VOCAB, OUT_VOCAB = 128, 128
    ENC_EMB, DEC_EMB = 128, 128
    ENC_HID, DEC_HID = 128, 128

    root = jax.random.PRNGKey(0)
    kp, ks, kt, ktf = jax.random.split(root, 4)

    params = make_params(kp, IN_VOCAB, OUT_VOCAB, ENC_EMB, DEC_EMB,
                         ENC_HID, DEC_HID)

    src = jax.random.randint(ks, (S, B), 0, IN_VOCAB, dtype=jnp.int32)
    tgt = jax.random.randint(kt, (T, B), 0, OUT_VOCAB, dtype=jnp.int32)
    src_len = jnp.full((B,), S, jnp.int32)
    tgt_len = jnp.full((B,), T, jnp.int32)

    outputs = seq2seq_forward(params, src, src_len, tgt, tgt_len, ktf,
                              teacher_forcing_ratio=0.5)
    outputs = jax.block_until_ready(outputs)
    assert outputs.shape == (T, B, OUT_VOCAB)
    assert bool(jnp.all(outputs[0] == 0.0))
    assert bool(jnp.all(jnp.isfinite(outputs)))
    print("KERNEL_OK")
</pallas_src>

<mosaic_0001>
module attributes {stable_mosaic.version = 11 : i64} {
  func.func @encoder_kernel(%arg0: memref<8x8x128xf32, #tpu.memory_space<vmem>>, %arg1: memref<128x384xbf16, #tpu.memory_space<vmem>>, %arg2: memref<128x384xbf16, #tpu.memory_space<vmem>>, %arg3: memref<1x384xf32, #tpu.memory_space<vmem>>, %arg4: memref<1x384xf32, #tpu.memory_space<vmem>>, %arg5: memref<128x384xbf16, #tpu.memory_space<vmem>>, %arg6: memref<128x384xbf16, #tpu.memory_space<vmem>>, %arg7: memref<1x384xf32, #tpu.memory_space<vmem>>, %arg8: memref<1x384xf32, #tpu.memory_space<vmem>>, %arg9: memref<256x128xbf16, #tpu.memory_space<vmem>>, %arg10: memref<1x128xf32, #tpu.memory_space<vmem>>, %arg11: memref<8x8x256xf32, #tpu.memory_space<vmem>>, %arg12: memref<8x128xf32, #tpu.memory_space<vmem>>, %arg13: memref<8x8x384xf32, #tpu.memory_space<vmem>>, %arg14: memref<8x8x384xf32, #tpu.memory_space<vmem>>) attributes {dimension_semantics = [], scalar_prefetch = 0 : i64, scratch_operands = 2 : i64, tpu.core_type = #tpu.core_type<tc>} {
    %c0 = arith.constant 0 : index
    %c0_0 = arith.constant 0 : index
    %c0_1 = arith.constant 0 : index
    %0 = vector.load %arg0[%c0, %c0_0, %c0_1] : memref<8x8x128xf32, #tpu.memory_space<vmem>>, vector<8x8x128xf32>
    %1 = vector.shape_cast %0 : vector<8x8x128xf32> to vector<64x128xf32>
    %2 = arith.truncf %1 : vector<64x128xf32> to vector<64x128xbf16>
    %c0_2 = arith.constant 0 : index
    %c0_3 = arith.constant 0 : index
    %3 = vector.load %arg1[%c0_2, %c0_3] : memref<128x384xbf16, #tpu.memory_space<vmem>>, vector<128x384xbf16>
    %cst = arith.constant dense<0.000000e+00> : vector<64x384xf32>
    %4 = tpu.matmul %2, %3, %cst {dimension_numbers = #tpu.dot_dimension_numbers<[1], [0], [0], [1], [0, 0, 1, 1], [], []>} : vector<64x128xbf16>, vector<128x384xbf16>, vector<64x384xf32> -> vector<64x384xf32>
    %c0_4 = arith.constant 0 : index
    %c0_5 = arith.constant 0 : index
    %5 = vector.load %arg3[%c0_4, %c0_5] : memref<1x384xf32, #tpu.memory_space<vmem>>, vector<1x384xf32>
    %6 = vector.broadcast %5 : vector<1x384xf32> to vector<64x384xf32>
    %7 = arith.addf %4, %6 : vector<64x384xf32>
    %8 = vector.shape_cast %7 : vector<64x384xf32> to vector<8x8x384xf32>
    %c0_6 = arith.constant 0 : index
    %c0_7 = arith.constant 0 : index
    %c0_8 = arith.constant 0 : index
    %9 = vector.load %arg13[%c0_6, %c0_7, %c0_8] : memref<8x8x384xf32, #tpu.memory_space<vmem>>, vector<8x8x384xf32>
    tpu.vector_store %arg13[%c0_6, %c0_7, %c0_8], %8 {strides = array<i32>} : memref<8x8x384xf32, #tpu.memory_space<vmem>>, vector<8x8x384xf32>,
    %c0_9 = arith.constant 0 : index
    %c0_10 = arith.constant 0 : index
    %10 = vector.load %arg5[%c0_9, %c0_10] : memref<128x384xbf16, #tpu.memory_space<vmem>>, vector<128x384xbf16>
    %cst_11 = arith.constant dense<0.000000e+00> : vector<64x384xf32>
    %11 = tpu.matmul %2, %10, %cst_11 {dimension_numbers = #tpu.dot_dimension_numbers<[1], [0], [0], [1], [0, 0, 1, 1], [], []>} : vector<64x128xbf16>, vector<128x384xbf16>, vector<64x384xf32> -> vector<64x384xf32>
    %c0_12 = arith.constant 0 : index
    %c0_13 = arith.constant 0 : index
    %12 = vector.load %arg7[%c0_12, %c0_13] : memref<1x384xf32, #tpu.memory_space<vmem>>, vector<1x384xf32>
    %13 = vector.broadcast %12 : vector<1x384xf32> to vector<64x384xf32>
    %14 = arith.addf %11, %13 : vector<64x384xf32>
    %15 = vector.shape_cast %14 : vector<64x384xf32> to vector<8x8x384xf32>
    %c0_14 = arith.constant 0 : index
    %c0_15 = arith.constant 0 : index
    %c0_16 = arith.constant 0 : index
    %16 = vector.load %arg14[%c0_14, %c0_15, %c0_16] : memref<8x8x384xf32, #tpu.memory_space<vmem>>, vector<8x8x384xf32>
    tpu.vector_store %arg14[%c0_14, %c0_15, %c0_16], %15 {strides = array<i32>} : memref<8x8x384xf32, #tpu.memory_space<vmem>>, vector<8x8x384xf32>,
    %c0_17 = arith.constant 0 : index
    %c0_18 = arith.constant 0 : index
    %17 = vector.load %arg2[%c0_17, %c0_18] : memref<128x384xbf16, #tpu.memory_space<vmem>>, vector<128x384xbf16>
    %c0_19 = arith.constant 0 : index
    %c0_20 = arith.constant 0 : index
    %18 = vector.load %arg4[%c0_19, %c0_20] : memref<1x384xf32, #tpu.memory_space<vmem>>, vector<1x384xf32>
    %c0_21 = arith.constant 0 : index
    %c0_22 = arith.constant 0 : index
    %19 = vector.load %arg6[%c0_21, %c0_22] : memref<128x384xbf16, #tpu.memory_space<vmem>>, vector<128x384xbf16>
    %c0_23 = arith.constant 0 : index
    %c0_24 = arith.constant 0 : index
    %20 = vector.load %arg8[%c0_23, %c0_24] : memref<1x384xf32, #tpu.memory_space<vmem>>, vector<1x384xf32>
    %cst_25 = arith.constant 0.000000e+00 : f32
    %21 = vector.broadcast %cst_25 : f32 to vector<8x128xf32>
    %c0_i32 = arith.constant 0 : i32
    %c8_i32 = arith.constant 8 : i32
    %22 = arith.addi %c0_i32, %c8_i32 : i32
    %c1_i32 = arith.constant 1 : i32
    %23:2 = scf.for %arg15 = %c0_i32 to %22 step %c1_i32 iter_args(%arg16 = %21, %arg17 = %21) -> (vector<8x128xf32>, vector<8x128xf32>)  : i32 {
      %c7_i32 = arith.constant 7 : i32
      %37 = arith.subi %c7_i32, %arg15 : i32
      %38 = arith.index_cast %arg15 : i32 to index
      %c0_35 = arith.constant 0 : index
      %c0_36 = arith.constant 0 : index
      %39 = vector.load %arg13[%38, %c0_35, %c0_36] : memref<8x8x384xf32, #tpu.memory_space<vmem>>, vector<1x8x384xf32>
      %40 = vector.shape_cast %39 : vector<1x8x384xf32> to vector<8x384xf32>
      %41 = arith.truncf %arg16 : vector<8x128xf32> to vector<8x128xbf16>
      %cst_37 = arith.constant dense<0.000000e+00> : vector<8x384xf32>
      %42 = tpu.matmul %41, %17, %cst_37 {dimension_numbers = #tpu.dot_dimension_numbers<[1], [0], [0], [1], [0, 0, 1, 1], [], []>} : vector<8x128xbf16>, vector<128x384xbf16>, vector<8x384xf32> -> vector<8x384xf32>
      %43 = vector.broadcast %18 : vector<1x384xf32> to vector<8x384xf32>
      %44 = arith.addf %42, %43 : vector<8x384xf32>
      %45 = vector.extract_strided_slice %40 {offsets = [0, 0], sizes = [8, 128], strides = [1, 1]} : vector<8x384xf32> to vector<8x128xf32>
      %46 = vector.extract_strided_slice %44 {offsets = [0, 0], sizes = [8, 128], strides = [1, 1]} : vector<8x384xf32> to vector<8x128xf32>
      %47 = arith.addf %45, %46 : vector<8x128xf32>
      %48 = arith.negf %47 : vector<8x128xf32>
      %49 = math.exp %48 : vector<8x128xf32>
      %cst_38 = arith.constant 1.000000e+00 : f32
      %50 = vector.broadcast %cst_38 : f32 to vector<8x128xf32>
      %51 = arith.addf %50, %49 : vector<8x128xf32>
      %52 = arith.divf %50, %51 : vector<8x128xf32>
      %53 = vector.extract_strided_slice %40 {offsets = [0, 128], sizes = [8, 128], strides = [1, 1]} : vector<8x384xf32> to vector<8x128xf32>
      %54 = vector.extract_strided_slice %44 {offsets = [0, 128], sizes = [8, 128], strides = [1, 1]} : vector<8x384xf32> to vector<8x128xf32>
      %55 = arith.addf %53, %54 : vector<8x128xf32>
      %56 = arith.negf %55 : vector<8x128xf32>
      %57 = math.exp %56 : vector<8x128xf32>
      %cst_39 = arith.constant 1.000000e+00 : f32
      %58 = vector.broadcast %cst_39 : f32 to vector<8x128xf32>
      %59 = arith.addf %58, %57 : vector<8x128xf32>
      %60 = arith.divf %58, %59 : vector<8x128xf32>
      %61 = vector.extract_strided_slice %40 {offsets = [0, 256], sizes = [8, 128], strides = [1, 1]} : vector<8x384xf32> to vector<8x128xf32>
      %62 = vector.extract_strided_slice %44 {offsets = [0, 256], sizes = [8, 128], strides = [1, 1]} : vector<8x384xf32> to vector<8x128xf32>
      %63 = arith.mulf %52, %62 : vector<8x128xf32>
      %64 = arith.addf %61, %63 : vector<8x128xf32>
      %65 = math.tanh %64 : vector<8x128xf32>
      %cst_40 = arith.constant 1.000000e+00 : f32
      %66 = vector.broadcast %cst_40 : f32 to vector<8x128xf32>
      %67 = arith.subf %66, %60 : vector<8x128xf32>
      %68 = arith.mulf %67, %65 : vector<8x128xf32>
      %69 = arith.mulf %60, %arg16 : vector<8x128xf32>
      %70 = arith.addf %68, %69 : vector<8x128xf32>
      %71 = arith.index_cast %37 : i32 to index
      %c0_41 = arith.constant 0 : index
      %c0_42 = arith.constant 0 : index
      %72 = vector.load %arg14[%71, %c0_41, %c0_42] : memref<8x8x384xf32, #tpu.memory_space<vmem>>, vector<1x8x384xf32>
      %73 = vector.shape_cast %72 : vector<1x8x384xf32> to vector<8x384xf32>
      %74 = arith.truncf %arg17 : vector<8x128xf32> to vector<8x128xbf16>
      %cst_43 = arith.constant dense<0.000000e+00> : vector<8x384xf32>
      %75 = tpu.matmul %74, %19, %cst_43 {dimension_numbers = #tpu.dot_dimension_numbers<[1], [0], [0], [1], [0, 0, 1, 1], [], []>} : vector<8x128xbf16>, vector<128x384xbf16>, vector<8x384xf32> -> vector<8x384xf32>
      %76 = vector.broadcast %20 : vector<1x384xf32> to vector<8x384xf32>
      %77 = arith.addf %75, %76 : vector<8x384xf32>
      %78 = vector.extract_strided_slice %73 {offsets = [0, 0], sizes = [8, 128], strides = [1, 1]} : vector<8x384xf32> to vector<8x128xf32>
      %79 = vector.extract_strided_slice %77 {offsets = [0, 0], sizes = [8, 128], strides = [1, 1]} : vector<8x384xf32> to vector<8x128xf32>
      %80 = arith.addf %78, %79 : vector<8x128xf32>
      %81 = arith.negf %80 : vector<8x128xf32>
      %82 = math.exp %81 : vector<8x128xf32>
      %cst_44 = arith.constant 1.000000e+00 : f32
      %83 = vector.broadcast %cst_44 : f32 to vector<8x128xf32>
      %84 = arith.addf %83, %82 : vector<8x128xf32>
      %85 = arith.divf %83, %84 : vector<8x128xf32>
      %86 = vector.extract_strided_slice %73 {offsets = [0, 128], sizes = [8, 128], strides = [1, 1]} : vector<8x384xf32> to vector<8x128xf32>
      %87 = vector.extract_strided_slice %77 {offsets = [0, 128], sizes = [8, 128], strides = [1, 1]} : vector<8x384xf32> to vector<8x128xf32>
      %88 = arith.addf %86, %87 : vector<8x128xf32>
      %89 = arith.negf %88 : vector<8x128xf32>
      %90 = math.exp %89 : vector<8x128xf32>
      %cst_45 = arith.constant 1.000000e+00 : f32
      %91 = vector.broadcast %cst_45 : f32 to vector<8x128xf32>
      %92 = arith.addf %91, %90 : vector<8x128xf32>
      %93 = arith.divf %91, %92 : vector<8x128xf32>
      %94 = vector.extract_strided_slice %73 {offsets = [0, 256], sizes = [8, 128], strides = [1, 1]} : vector<8x384xf32> to vector<8x128xf32>
      %95 = vector.extract_strided_slice %77 {offsets = [0, 256], sizes = [8, 128], strides = [1, 1]} : vector<8x384xf32> to vector<8x128xf32>
      %96 = arith.mulf %85, %95 : vector<8x128xf32>
      %97 = arith.addf %94, %96 : vector<8x128xf32>
      %98 = math.tanh %97 : vector<8x128xf32>
      %cst_46 = arith.constant 1.000000e+00 : f32
      %99 = vector.broadcast %cst_46 : f32 to vector<8x128xf32>
      %100 = arith.subf %99, %93 : vector<8x128xf32>
      %101 = arith.mulf %100, %98 : vector<8x128xf32>
      %102 = arith.mulf %93, %arg17 : vector<8x128xf32>
      %103 = arith.addf %101, %102 : vector<8x128xf32>
      %104 = arith.index_cast %arg15 : i32 to index
      %c0_47 = arith.constant 0 : index
      %c0_48 = arith.constant 0 : index
      %105 = vector.load %arg11[%104, %c0_47, %c0_48] : memref<8x8x256xf32, #tpu.memory_space<vmem>>, vector<1x8x128xf32>
      %106 = vector.shape_cast %105 : vector<1x8x128xf32> to vector<8x128xf32>
      %107 = vector.shape_cast %70 : vector<8x128xf32> to vector<1x8x128xf32>
      tpu.vector_store %arg11[%104, %c0_47, %c0_48], %107 {strides = array<i32>} : memref<8x8x256xf32, #tpu.memory_space<vmem>>, vector<1x8x128xf32>,
      %108 = arith.index_cast %37 : i32 to index
      %c0_49 = arith.constant 0 : index
      %c128 = arith.constant 128 : index
      %109 = vector.load %arg11[%108, %c0_49, %c128] : memref<8x8x256xf32, #tpu.memory_space<vmem>>, vector<1x8x128xf32>
      %110 = vector.shape_cast %109 : vector<1x8x128xf32> to vector<8x128xf32>
      %111 = vector.shape_cast %103 : vector<8x128xf32> to vector<1x8x128xf32>
      tpu.vector_store %arg11[%108, %c0_49, %c128], %111 {strides = array<i32>} : memref<8x8x256xf32, #tpu.memory_space<vmem>>, vector<1x8x128xf32>,
      scf.yield %70, %103 : vector<8x128xf32>, vector<8x128xf32>
    }
    %c8_i32_26 = arith.constant 8 : i32
    %c0_27 = arith.constant 0 : index
    %c0_28 = arith.constant 0 : index
    %24 = vector.load %arg9[%c0_27, %c0_28] : memref<256x128xbf16, #tpu.memory_space<vmem>>, vector<256x128xbf16>
    %25 = arith.truncf %23#0 : vector<8x128xf32> to vector<8x128xbf16>
    %26 = vector.extract_strided_slice %24 {offsets = [0, 0], sizes = [128, 128], strides = [1, 1]} : vector<256x128xbf16> to vector<128x128xbf16>
    %cst_29 = arith.constant dense<0.000000e+00> : vector<8x128xf32>
    %27 = tpu.matmul %25, %26, %cst_29 {dimension_numbers = #tpu.dot_dimension_numbers<[1], [0], [0], [1], [0, 0, 1, 1], [], []>} : vector<8x128xbf16>, vector<128x128xbf16>, vector<8x128xf32> -> vector<8x128xf32>
    %28 = arith.truncf %23#1 : vector<8x128xf32> to vector<8x128xbf16>
    %29 = vector.extract_strided_slice %24 {offsets = [128, 0], sizes = [128, 128], strides = [1, 1]} : vector<256x128xbf16> to vector<128x128xbf16>
    %cst_30 = arith.constant dense<0.000000e+00> : vector<8x128xf32>
    %30 = tpu.matmul %28, %29, %cst_30 {dimension_numbers = #tpu.dot_dimension_numbers<[1], [0], [0], [1], [0, 0, 1, 1], [], []>} : vector<8x128xbf16>, vector<128x128xbf16>, vector<8x128xf32> -> vector<8x128xf32>
    %31 = arith.addf %27, %30 : vector<8x128xf32>
    %c0_31 = arith.constant 0 : index
    %c0_32 = arith.constant 0 : index
    %32 = vector.load %arg10[%c0_31, %c0_32] : memref<1x128xf32, #tpu.memory_space<vmem>>, vector<1x128xf32>
    %33 = vector.broadcast %32 : vector<1x128xf32> to vector<8x128xf32>
    %34 = arith.addf %31, %33 : vector<8x128xf32>
    %35 = math.tanh %34 : vector<8x128xf32>
    %c0_33 = arith.constant 0 : index
    %c0_34 = arith.constant 0 : index
    %36 = vector.load %arg12[%c0_33, %c0_34] : memref<8x128xf32, #tpu.memory_space<vmem>>, vector<8x128xf32>
    tpu.vector_store %arg12[%c0_33, %c0_34], %35 {strides = array<i32>} : memref<8x128xf32, #tpu.memory_space<vmem>>, vector<8x128xf32>,
    return
  }
}

</mosaic_0001>

<bundles_post_ra>
// kernel: tpu_custom_call.1
= control target key start
LH: loop header
LB: loop body
LE: loop exit
PB: predicated region body
PF: predicated region fallthrough
CT: control target
= control target key end

     0   :  { %18 = vsyncpa [#allocation5], 0  ;;  %s2994_s0 = inlined_call_operand.hbm [shape: f32[8,8,128], index: 0, kind: input, shape index: {}]   ;;  %s2995_s1 = inlined_call_operand.hbm [shape: bf16[128,384], index: 1, kind: input, shape index: {}]   ;;  %s2996_s2 = inlined_call_operand.hbm [shape: bf16[128,384], index: 2, kind: input, shape index: {}]   ;;  %s2997_s3 = inlined_call_operand.hbm [shape: f32[1,384], index: 3, kind: input, shape index: {}]   ;;  %s2998_s4 = inlined_call_operand.vmem [shape: f32[1,384], index: 4, kind: input, shape index: {}]   ;;  %s2999_s5 = inlined_call_operand.hbm [shape: bf16[128,384], index: 5, kind: input, shape index: {}]   ;;  %s3000_s6 = inlined_call_operand.hbm [shape: bf16[128,384], index: 6, kind: input, shape index: {}]   ;;  %s3001_s7 = inlined_call_operand.vmem [shape: f32[1,384], index: 7, kind: input, shape index: {}]   ;;  %s3002_s8 = inlined_call_operand.hbm [shape: f32[1,384], index: 8, kind: input, shape index: {}]   ;;  %s3003_s9 = inlined_call_operand.hbm [shape: bf16[256,128], index: 9, kind: input, shape index: {}]   ;;  %s3004_s10 = inlined_call_operand.vmem [shape: f32[1,128], index: 10, kind: input, shape index: {}]   ;;  %s3005_s11 = inlined_call_operand.hbm [shape: f32[8,8,256], index: 11, kind: output, shape index: {0}]   ;;  %s3006_s12 = inlined_call_operand.hbm [shape: f32[8,128], index: 12, kind: output, shape index: {1}]  }
   0x1   :  { %19 = vsyncpa [#allocation8], 0 }
   0x2   :  { %20 = vsyncpa [#allocation11], 0 }
   0x3   :  { %21 = vsyncpa [#allocation14], 0 }
   0x4   :  { %22 = vsyncpa [#allocation17], 0 }
   0x5   :  { %23 = vsyncpa [#allocation6], 0  ;;  %s42_s23 = sshll.u32 %s2995_s1, 4  ;;  %s43_s23 = int_to_ptr.hbm [resolvable:$true] %s42_s23 }
   0x6   :  { %24 = vsyncpa [#allocation20], 0  ;;  %s2426_s24 = smov [#allocation7]   ;;  %s69_s28 = sshll.u32 %s2997_s3, 4  ;;  %s70_s28 = int_to_ptr.hbm [resolvable:$true] %s69_s28 }
   0x7   :  { %s44_s25 = sshll.u32 %s2426_s24, 4  ;;  %s2427_s29 = smov 192   ;;  %s45_s25 = int_to_ptr.vmem [resolvable:$true] %s44_s25 }
   0x8   :  { %s2428_s30 = smov 12   ;;  %s2429_s13 = smov [#allocation10]  }
   0x9   :  { %50 = dma.hbm_to_vmem [thread:$0]  %s43_s23, 3072, %s45_s25, [#allocation8], %s2427_s29, %s2427_s29, %s2428_s30  }
   0xa   :  { %s71_s14 = sshll.u32 %s2429_s13, 4  ;;  %s94_s16 = sshll.u32 %s3000_s6, 4  ;;  %s72_s14 = int_to_ptr.vmem [resolvable:$true] %s71_s14  ;;  %s95_s16 = int_to_ptr.hbm [resolvable:$true] %s94_s16 }
   0xb   :  { %74 = dma.hbm_to_vmem [thread:$0]  %s70_s28, 48, %s72_s14, [#allocation11]  }
   0xc   :  { %s29_s3 = sshll.u32 %s2994_s0, 4  ;;  %s2430_s19 = smov [#allocation13]   ;;  %s30_s3 = int_to_ptr.hbm [resolvable:$true] %s29_s3 }
   0xd   :  { %s96_s20 = sshll.u32 %s2430_s19, 4  ;;  %s2431_s21 = smov [#allocation4]   ;;  %s97_s20 = int_to_ptr.vmem [resolvable:$true] %s96_s20 }
   0xe   :  { %102 = dma.hbm_to_vmem [thread:$0]  %s95_s16, 3072, %s97_s20, [#allocation14], %s2427_s29, %s2427_s29, %s2428_s30  }
   0xf   :  { %s31_s22 = sshll.u32 %s2431_s21, 4  ;;  %s2432_s23 = smov 128   ;;  %s32_s22 = int_to_ptr.vmem [resolvable:$true] %s31_s22 }
  0x10   :  { %s2433_s6 = smov 8   ;;  %s55_s26 = sshll.u32 %s2996_s2, 4  ;;  %s56_s26 = int_to_ptr.hbm [resolvable:$true] %s55_s26 }
  0x11   :  { %37 = dma.hbm_to_vmem [thread:$0]  %s30_s3, 1024, %s32_s22, [#allocation5], %s2432_s23, %s2432_s23, %s2433_s6  }
  0x12   :  { %s2434_s0 = smov [#allocation9]   ;;  %s81_s14 = sshll.u32 %s2999_s5, 4  ;;  %s82_s14 = int_to_ptr.hbm [resolvable:$true] %s81_s14 }
  0x13   :  { %s57_s27 = sshll.u32 %s2434_s0, 4  ;;  %s2435_s15 = smov [#allocation12]   ;;  %s58_s27 = int_to_ptr.vmem [resolvable:$true] %s57_s27 }
  0x14   :  { %63 = dma.hbm_to_vmem [thread:$0]  %s56_s26, 3072, %s58_s27, [#allocation8], %s2427_s29, %s2427_s29, %s2428_s30  }
  0x15   :  { %s83_s1 = sshll.u32 %s2435_s15, 4  ;;  %s110_s18 = sshll.u32 %s3002_s8, 4  ;;  %s84_s1 = int_to_ptr.vmem [resolvable:$true] %s83_s1  ;;  %s111_s18 = int_to_ptr.hbm [resolvable:$true] %s110_s18 }
  0x16   :  { %89 = dma.hbm_to_vmem [thread:$0]  %s82_s14, 3072, %s84_s1, [#allocation11], %s2427_s29, %s2427_s29, %s2428_s30  }
  0x17   :  { %s120_s5 = sshll.u32 %s3003_s9, 4  ;;  %s2436_s19 = smov [#allocation15]   ;;  %s121_s5 = int_to_ptr.hbm [resolvable:$true] %s120_s5 }
  0x18   :  { %s112_s20 = sshll.u32 %s2436_s19, 4  ;;  %s2437_s21 = smov [#allocation16]   ;;  %s113_s20 = int_to_ptr.vmem [resolvable:$true] %s112_s20 }
  0x19   :  { %115 = dma.hbm_to_vmem [thread:$0]  %s111_s18, 48, %s113_s20, [#allocation14]  }
  0x1a   :  { %s122_s22 = sshll.u32 %s2437_s21, 4  ;;  %s2438_s23 = smov 64   ;;  %s123_s22 = int_to_ptr.vmem [resolvable:$true] %s122_s22 }
  0x1b   :  { %s2439_s8 = smov 4  }
  0x1c   :  { %128 = dma.hbm_to_vmem [thread:$0]  %s121_s5, 2048, %s123_s22, [#allocation17], %s2438_s23, %s2438_s23, %s2439_s8  }
  0x1d   :  { %2400 = dma.done.wait [#allocation5], 1024  }
  0x1e   :  { %2401 = vsyncadd [#allocation5], 4294966272 }
  0x1f   :  { %2402 = dma.done.wait [#allocation8], 6144  }
  0x20   :  { %2403 = vsyncadd [#allocation8], 4294961152 }
  0x21   :  { %2404 = dma.done.wait [#allocation11], 3120  }
  0x22   :  { %2405 = vsyncadd [#allocation11], 4294964176 }
  0x23   :  { %2406 = dma.done.wait [#allocation14], 3120  }
  0x24   :  { %2407 = vsyncadd [#allocation14], 4294964176 }
  0x25   :  { %2408 = dma.done.wait [#allocation17], 2048  }
  0x26   :  { %2409 = vsyncadd [#allocation17], 4294965248  ;;  %v2545_v0 = vld [vmem:[#allocation9 + $0x4] sm:$0xf]  ;;  %v2547_v1 = vld [vmem:[#allocation9] sm:$0xf] }
  0x27   :  { %3009 = vst [vmem:[#allocation28_spill] sm:$0xff] %v2545_v0  ;;  %v2549_v2 = vld [vmem:[#allocation9 + $0x8] sm:$0xf]  ;;  %v2551_v3 = vld [vmem:[#allocation9 + $0xc] sm:$0xf0] }
  0x28   :  { %3010 = vst [vmem:[#allocation29_spill] sm:$0xff] %v2547_v1  ;;  %v2553_v4 = vld [vmem:[#allocation9 + $0x8] sm:$0xf0]  ;;  %v2555_v5 = vld [vmem:[#allocation9 + $0x10] sm:$0xf0] }
  0x29   :  { %3011 = vst [vmem:[#allocation30_spill] sm:$0xff] %v2549_v2  ;;  %v2557_v6 = vld [vmem:[#allocation9 + $0x1c] sm:$0xf]  ;;  %v2559_v7 = vld [vmem:[#allocation9 + $0x18] sm:$0xf] }
  0x2a   :  { %3012 = vst [vmem:[#allocation31_spill] sm:$0xff] %v2551_v3  ;;  %v2561_v8 = vld [vmem:[#allocation9 + $0x20] sm:$0xf]  ;;  %v2563_v9 = vld [vmem:[#allocation9 + $0x24] sm:$0xf0] }
  0x2b   :  { %3013 = vst [vmem:[#allocation32_spill] sm:$0xff] %v2553_v4  ;;  %v2565_v10 = vld [vmem:[#allocation9 + $0x20] sm:$0xf0]  ;;  %v2567_v11 = vld [vmem:[#allocation9 + $0x28] sm:$0xf0] }
  0x2c   :  { %3014 = vst [vmem:[#allocation33_spill] sm:$0xff] %v2555_v5  ;;  %v2569_v12 = vld [vmem:[#allocation9 + $0x34] sm:$0xf]  ;;  %v2571_v13 = vld [vmem:[#allocation9 + $0x30] sm:$0xf] }
  0x2d   :  { %3015 = vst [vmem:[#allocation34_spill] sm:$0xff] %v2557_v6  ;;  %v2573_v14 = vld [vmem:[#allocation9 + $0x38] sm:$0xf]  ;;  %v2575_v15 = vld [vmem:[#allocation9 + $0x3c] sm:$0xf0] }
  0x2e   :  { %3016 = vst [vmem:[#allocation35_spill] sm:$0xff] %v2559_v7  ;;  %v2577_v16 = vld [vmem:[#allocation9 + $0x38] sm:$0xf0]  ;;  %v2579_v17 = vld [vmem:[#allocation9 + $0x40] sm:$0xf0] }
  0x2f   :  { %3017 = vst [vmem:[#allocation36_spill] sm:$0xff] %v2561_v8  ;;  %v2581_v18 = vld [vmem:[#allocation9 + $0x4c] sm:$0xf]  ;;  %v2583_v19 = vld [vmem:[#allocation9 + $0x48] sm:$0xf] }
  0x30   :  { %3018 = vst [vmem:[#allocation37_spill] sm:$0xff] %v2563_v9  ;;  %v2585_v20 = vld [vmem:[#allocation9 + $0x50] sm:$0xf]  ;;  %v2587_v21 = vld [vmem:[#allocation9 + $0x54] sm:$0xf0] }
  0x31   :  { %3019 = vst [vmem:[#allocation38_spill] sm:$0xff] %v2565_v10  ;;  %v2589_v22 = vld [vmem:[#allocation9 + $0x50] sm:$0xf0]  ;;  %v2591_v23 = vld [vmem:[#allocation9 + $0x58] sm:$0xf0] }
  0x32   :  { %3020 = vst [vmem:[#allocation39_spill] sm:$0xff] %v2567_v11  ;;  %v2593_v24 = vld [vmem:[#allocation9 + $0x64] sm:$0xf]  ;;  %v2595_v25 = vld [vmem:[#allocation9 + $0x60] sm:$0xf] }
  0x33   :  { %3021 = vst [vmem:[#allocation40_spill] sm:$0xff] %v2569_v12  ;;  %v2597_v26 = vld [vmem:[#allocation9 + $0x68] sm:$0xf]  ;;  %v2599_v27 = vld [vmem:[#allocation9 + $0x6c] sm:$0xf0] }
  0x34   :  { %3022 = vst [vmem:[#allocation41_spill] sm:$0xff] %v2571_v13  ;;  %v2601_v28 = vld [vmem:[#allocation9 + $0x68] sm:$0xf0]  ;;  %v2603_v29 = vld [vmem:[#allocation9 + $0x70] sm:$0xf0] }
  0x35   :  { %3023 = vst [vmem:[#allocation42_spill] sm:$0xff] %v2573_v14  ;;  %v2605_v30 = vld [vmem:[#allocation9 + $0x7c] sm:$0xf]  ;;  %v2607_v31 = vld [vmem:[#allocation9 + $0x78] sm:$0xf]  ;;  %v168_v12 = vld [vmem:[#allocation4 + $0x28] sm:$0xff] }
  0x36   :  { %3024 = vst [vmem:[#allocation43_spill] sm:$0xff] %v2575_v15  ;;  %v2609_v32 = vld [vmem:[#allocation9 + $0x80] sm:$0xf]  ;;  %v2611_v33 = vld [vmem:[#allocation9 + $0x84] sm:$0xf0] }
  0x37   :  { %3025 = vst [vmem:[#allocation44_spill] sm:$0xff] %v2577_v16  ;;  %v2613_v34 = vld [vmem:[#allocation9 + $0x80] sm:$0xf0]  ;;  %v2615_v35 = vld [vmem:[#allocation9 + $0x88] sm:$0xf0] }
  0x38   :  { %3026 = vst [vmem:[#allocation45_spill] sm:$0xff] %v2579_v17  ;;  %v2617_v36 = vld [vmem:[#allocation9 + $0x94] sm:$0xf]  ;;  %v2619_v37 = vld [vmem:[#allocation9 + $0x90] sm:$0xf] }
  0x39   :  { %3027 = vst [vmem:[#allocation46_spill] sm:$0xff] %v2581_v18  ;;  %v2621_v38 = vld [vmem:[#allocation9 + $0x98] sm:$0xf]  ;;  %v2623_v39 = vld [vmem:[#allocation9 + $0x9c] sm:$0xf0]  ;;  %v169_v18 = vld [vmem:[#allocation4 + $0x30] sm:$0xff] }
  0x3a   :  { %3028 = vst [vmem:[#allocation47_spill] sm:$0xff] %v2583_v19  ;;  %v2625_v40 = vld [vmem:[#allocation9 + $0x98] sm:$0xf0]  ;;  %v2627_v41 = vld [vmem:[#allocation9 + $0xa0] sm:$0xf0] }
  0x3b   :  { %3029 = vst [vmem:[#allocation48_spill] sm:$0xff] %v2585_v20  ;;  %v2629_v42 = vld [vmem:[#allocation9 + $0xac] sm:$0xf]  ;;  %v2631_v43 = vld [vmem:[#allocation9 + $0xa8] sm:$0xf]  ;;  %v167_v20 = vld [vmem:[#allocation4 + $0x20] sm:$0xff] }
  0x3c   :  { %3030 = vst [vmem:[#allocation49_spill] sm:$0xff] %v2587_v21  ;;  %v2633_v44 = vld [vmem:[#allocation9 + $0xb0] sm:$0xf]  ;;  %v2635_v45 = vld [vmem:[#allocation9 + $0xb4] sm:$0xf0]  ;;  %v2746_v16 = vpack.c.bf16 %v168_v12, %v167_v20 }
  0x3d   :  { %3031 = vst [vmem:[#allocation50_spill] sm:$0xff] %v2589_v22  ;;  %v2637_v46 = vld [vmem:[#allocation9 + $0xb0] sm:$0xf0]  ;;  %v2639_v47 = vld [vmem:[#allocation9 + $0xb8] sm:$0xf0] }
  0x3e   :  { %3032 = vst [vmem:[#allocation51_spill] sm:$0xff] %v2591_v23  ;;  %v2644_v48 = vld [vmem:[%s2998_s4] sm:$0x7]  ;;  %v2646_v49 = vld [vmem:[#allocation13 + $0x4] sm:$0xf]  ;;  %v170_v21 = vld [vmem:[#allocation4 + $0x38] sm:$0xff] }
  0x3f   :  { %3033 = vst [vmem:[#allocation52_spill] sm:$0xff] %v2597_v26  ;;  %v2648_v50 = vld [vmem:[#allocation13] sm:$0xf]  ;;  %v2650_v51 = vld [vmem:[#allocation13 + $0x8] sm:$0xf] }
  0x40   :  { %3034 = vst [vmem:[#allocation53_spill] sm:$0xff] %v2603_v29  ;;  %v2652_v52 = vld [vmem:[#allocation13 + $0xc] sm:$0xf0]  ;;  %v2654_v53 = vld [vmem:[#allocation13 + $0x8] sm:$0xf0]  ;;  %v163_v23 = vld [vmem:[#allocation4] sm:$0xff] }
  0x41   :  { %3035 = vst [vmem:[#allocation54_spill] sm:$0xff] %v2644_v48  ;;  %v2656_v54 = vld [vmem:[#allocation13 + $0x10] sm:$0xf0]  ;;  %v2658_v55 = vld [vmem:[#allocation13 + $0x1c] sm:$0xf] }
  0x42   :  { %3036 = vst [vmem:[#allocation55_spill] sm:$0xff] %v2646_v49  ;;  %v2660_v56 = vld [vmem:[#allocation13 + $0x18] sm:$0xf]  ;;  %v2662_v57 = vld [vmem:[#allocation13 + $0x20] sm:$0xf] }
  0x43   :  { %3037 = vst [vmem:[#allocation56_spill] sm:$0xff] %v2648_v50  ;;  %v2664_v58 = vld [vmem:[#allocation13 + $0x24] sm:$0xf0]  ;;  %v2666_v59 = vld [vmem:[#allocation13 + $0x20] sm:$0xf0] }
  0x44   :  { %3038 = vst [vmem:[#allocation57_spill] sm:$0xff] %v2650_v51  ;;  %v2668_v60 = vld [vmem:[#allocation13 + $0x28] sm:$0xf0]  ;;  %v2670_v61 = vld [vmem:[#allocation13 + $0x34] sm:$0xf] }
  0x45   :  { %3039 = vst [vmem:[#allocation58_spill] sm:$0xff] %v2652_v52  ;;  %v2672_v62 = vld [vmem:[#allocation13 + $0x30] sm:$0xf]  ;;  %v2674_v63 = vld [vmem:[#allocation13 + $0x38] sm:$0xf] }
  0x46   :  { %3040 = vst [vmem:[#allocation59_spill] sm:$0xff] %v2654_v53  ;;  %v2676_v48 = vld [vmem:[#allocation13 + $0x3c] sm:$0xf0]  ;;  %v2680_v51 = vld [vmem:[#allocation13 + $0x40] sm:$0xf0] }
  0x47   :  { %3041 = vst [vmem:[#allocation60_spill] sm:$0xff] %v2656_v54  ;;  %v2678_v54 = vld [vmem:[#allocation13 + $0x38] sm:$0xf0]  ;;  %v2682_v49 = vld [vmem:[#allocation13 + $0x4c] sm:$0xf] }
  0x48   :  { %3042 = vst [vmem:[#allocation61_spill] sm:$0xff] %v2658_v55  ;;  %v2684_v52 = vld [vmem:[#allocation13 + $0x48] sm:$0xf]  ;;  %v2688_v55 = vld [vmem:[#allocation13 + $0x54] sm:$0xf0] }
  0x49   :  { %3043 = vst [vmem:[#allocation62_spill] sm:$0xff] %v2660_v56  ;;  %v2700_v5 = vld [vmem:[#allocation13 + $0x6c] sm:$0xf0]  ;;  %v2706_v2 = vld [vmem:[#allocation13 + $0x7c] sm:$0xf] }
  0x4a   :  { %3044 = vst [vmem:[#allocation63_spill] sm:$0xff] %v2662_v57  ;;  %v2686_v57 = vld [vmem:[#allocation13 + $0x50] sm:$0xf]  ;;  %v2712_v11 = vld [vmem:[#allocation13 + $0x84] sm:$0xf0] }
  0x4b   :  { %3045 = vst [vmem:[#allocation64_spill] sm:$0xff] %v2664_v58  ;;  %v2692_v58 = vld [vmem:[#allocation13 + $0x58] sm:$0xf0]  ;;  %v2718_v8 = vld [vmem:[#allocation13 + $0x94] sm:$0xf] }
  0x4c   :  { %3046 = vst [vmem:[#allocation65_spill] sm:$0xff] %v2666_v59  ;;  %v2724_v0 = vld [vmem:[#allocation13 + $0x9c] sm:$0xf0]  ;;  %v2730_v3 = vld [vmem:[#allocation13 + $0xac] sm:$0xf] }
  0x4d   :  { %3047 = vst [vmem:[#allocation66_spill] sm:$0xff] %v2668_v60  ;;  %v2690_v60 = vld [vmem:[#allocation13 + $0x50] sm:$0xf0]  ;;  %v2736_v53 = vld [vmem:[#allocation13 + $0xb4] sm:$0xf0] }
  0x4e   :  { %3048 = vst [vmem:[#allocation67_spill] sm:$0xff] %v2670_v61  ;;  %v2694_v61 = vld [vmem:[#allocation13 + $0x64] sm:$0xf]  ;;  %v2742_v50 = vld [vmem:[#allocation15] sm:$0x7] }
  0x4f   :  { %3049 = vst [vmem:[#allocation68_spill] sm:$0xff] %v2672_v62  ;;  %v1972_v4 = vld [vmem:[#allocation7 + $0xac] sm:$0xf]  ;;  %v1581_v1 = vld [vmem:[#allocation7 + $0xb4] sm:$0xf0] }
  0x50   :  { %3050 = vst [vmem:[#allocation69_spill] sm:$0xff] %v2674_v63  ;;  %v2696_v63 = vld [vmem:[#allocation13 + $0x60] sm:$0xf]  ;;  %v1567_v14 = vld [vmem:[#allocation7 + $0x90] sm:$0xf] }
  0x51   :  { %3051 = vst [vmem:[#allocation70_spill] sm:$0xff] %v2676_v48  ;;  %v2698_v48 = vld [vmem:[#allocation13 + $0x68] sm:$0xf]  ;;  %v1969_v6 = vld [vmem:[#allocation7 + $0x94] sm:$0xf] }
  0x52   :  { %3052 = vst [vmem:[#allocation71_spill] sm:$0xff] %v2678_v54  ;;  %v1569_v9 = vld [vmem:[#allocation7 + $0x9c] sm:$0xf0]  ;;  %v1555_v59 = vld [vmem:[#allocation7 + $0x78] sm:$0xf] }
  0x53   :  { %3053 = vst [vmem:[#allocation72_spill] sm:$0xff] %v2680_v51  ;;  %v2702_v51 = vld [vmem:[#allocation13 + $0x68] sm:$0xf0]  ;;  %v1966_v56 = vld [vmem:[#allocation7 + $0x7c] sm:$0xf] }
  0x54   :  { %3054 = vst [vmem:[#allocation73_spill] sm:$0xff] %v2682_v49  ;;  %v2704_v49 = vld [vmem:[#allocation13 + $0x70] sm:$0xf0]  ;;  %v1545_v7 = vld [vmem:[#allocation7 + $0x6c] sm:$0xf0] }
  0x55   :  { %3055 = vst [vmem:[#allocation74_spill] sm:$0xff] %v2684_v52  ;;  %v1998_v15 = vld [vmem:[#allocation12 + $0xb8] sm:$0xf0]  ;;  %v1575_v54 = vld [vmem:[#allocation7 + $0x98] sm:$0xf] }
  0x56   :  { %3056 = vst [vmem:[#allocation75_spill] sm:$0xff] %v2686_v57  ;;  %v2708_v57 = vld [vmem:[#allocation13 + $0x78] sm:$0xf]  ;;  %v1971_v13 = vld [vmem:[#allocation7 + $0xa0] sm:$0xf0] }
  0x57   :  { %3057 = vst [vmem:[#allocation76_spill] sm:$0xff] %v2688_v55  ;;  %v2710_v55 = vld [vmem:[#allocation13 + $0x80] sm:$0xf]  ;;  %v1968_v12 = vld [vmem:[#allocation7 + $0x88] sm:$0xf0] }
  0x58   :  { %3058 = vst [vmem:[#allocation77_spill] sm:$0xff] %v2690_v60  ;;  %v1651_v20 = vld [vmem:[#allocation12 + $0x78] sm:$0xf]  ;;  %v1615_v60 = vld [vmem:[#allocation12 + $0x30] sm:$0xf] }
  0x59   :  { %3059 = vst [vmem:[#allocation78_spill] sm:$0xff] %v2692_v58  ;;  %v2714_v58 = vld [vmem:[#allocation13 + $0x80] sm:$0xf0]  ;;  %v1982_v52 = vld [vmem:[#allocation12 + $0x38] sm:$0xf0] }
  0x5a   :  { %3060 = vst [vmem:[#allocation79_spill] sm:$0xff] %v2694_v61  ;;  %v2716_v61 = vld [vmem:[#allocation13 + $0x88] sm:$0xf0] }
  0x5b   :  { %3061 = vst [vmem:[#allocation80_spill] sm:$0xff] %v2698_v48  ;;  %v2720_v48 = vld [vmem:[#allocation13 + $0x90] sm:$0xf] }
  0x5c   :  { %3062 = vst [vmem:[#allocation81_spill] sm:$0xff] %v2700_v5  ;;  %v2722_v5 = vld [vmem:[#allocation13 + $0x98] sm:$0xf] }
  0x5d   :  { %3063 = vst [vmem:[#allocation82_spill] sm:$0xff] %v2704_v49  ;;  %v2726_v49 = vld [vmem:[#allocation13 + $0x98] sm:$0xf0] }
  0x5e   :  { %3064 = vst [vmem:[#allocation83_spill] sm:$0xff] %v2706_v2  ;;  %v2728_v2 = vld [vmem:[#allocation13 + $0xa0] sm:$0xf0] }
  0x5f   :  { %3065 = vst [vmem:[#allocation84_spill] sm:$0xff] %v2710_v55  ;;  %v2732_v55 = vld [vmem:[#allocation13 + $0xa8] sm:$0xf] }
  0x60   :  { %3066 = vst [vmem:[#allocation85_spill] sm:$0xff] %v2712_v11  ;;  %v2734_v11 = vld [vmem:[#allocation13 + $0xb0] sm:$0xf] }
  0x61   :  { %3067 = vst [vmem:[#allocation86_spill] sm:$0xff] %v2716_v61  ;;  %v2738_v61 = vld [vmem:[#allocation13 + $0xb0] sm:$0xf0] }
  0x62   :  { %3068 = vst [vmem:[#allocation87_spill] sm:$0xff] %v2718_v8  ;;  %v2740_v8 = vld [vmem:[#allocation13 + $0xb8] sm:$0xf0] }
  0x63   :  { %3069 = vst [vmem:[#allocation88_spill] sm:$0xff] %v2722_v5  ;;  %v1579_v5 = vld [vmem:[#allocation7 + $0xa8] sm:$0xf] }
  0x64   :  { %3070 = vst [vmem:[#allocation89_spill] sm:$0xff] %v2724_v0  ;;  %v1973_v0 = vld [vmem:[#allocation7 + $0xb0] sm:$0xf0] }
  0x65   :  { %3071 = vst [vmem:[#allocation90_spill] sm:$0xff] %v2728_v2  ;;  %v1580_v17 = vor.u32 %v1973_v0, %v1579_v5  ;;  %v1584_v2 = vor.u32 %v1972_v4, %v1581_v1  ;;  %v1543_v1 = vld [vmem:[#allocation7 + $0x60] sm:$0xf]  ;;  %v1964_v4 = vld [vmem:[#allocation7 + $0x68] sm:$0xf0] }
  0x66   :  { %3072 = vst [vmem:[#allocation91_spill] sm:$0xff] %v2730_v3  ;;  %v1970_v3 = vld [vmem:[#allocation7 + $0x98] sm:$0xf0]  ;;  %v1963_v5 = vld [vmem:[#allocation7 + $0x64] sm:$0xf] }
  0x67   :  { %3073 = vst [vmem:[#allocation92_spill] sm:$0xff] %v2734_v11  ;;  %343 = vmatpush.bf16.msra.mxu0 %v1580_v17  ;;  %2067 = vmatpush.bf16.msra.mxu2 %v1580_v17  ;;  %v1568_v11 = vor.u32 %v1970_v3, %v1567_v14  ;;  %v1544_v3 = vor.u32 %v1964_v4, %v1543_v1  ;;  %v1960_v14 = vld [vmem:[#allocation7 + $0x4c] sm:$0xf]  ;;  %v1533_v17 = vld [vmem:[#allocation7 + $0x54] sm:$0xf0] }
  0x68   :  { %3074 = vst [vmem:[#allocation93_spill] sm:$0xff] %v2736_v53  ;;  %372 = vmatpush.bf16.msra.mxu1 %v1584_v2  ;;  %2075 = vmatpush.bf16.msra.mxu3 %v1584_v2  ;;  %v1572_v53 = vor.u32 %v1969_v6, %v1569_v9  ;;  %v1548_v2 = vor.u32 %v1963_v5, %v1545_v7  ;;  %v1531_v6 = vld [vmem:[#allocation7 + $0x48] sm:$0xf]  ;;  %v1961_v9 = vld [vmem:[#allocation7 + $0x50] sm:$0xf0] }
  0x69   :  { %3075 = vst [vmem:[#allocation94_spill] sm:$0xff] %v2740_v8  ;;  %v1967_v8 = vld [vmem:[#allocation7 + $0x80] sm:$0xf0]  ;;  %v1954_v4 = vld [vmem:[#allocation7 + $0x1c] sm:$0xf] }
  0x6a   :  { %3076 = vst [vmem:[#allocation95_spill] sm:$0xff] %v2742_v50  ;;  %v1557_v50 = vld [vmem:[#allocation7 + $0x84] sm:$0xf0]  ;;  %v1556_v10 = vor.u32 %v1967_v8, %v1555_v59  ;;  %v1532_v8 = vor.u32 %v1961_v9, %v1531_v6  ;;  %v1521_v59 = vld [vmem:[#allocation7 + $0x3c] sm:$0xf0] }
  0x6b   :  { %344 = vmatpush.bf16.msra.mxu0 %v1568_v11  ;;  %2068 = vmatpush.bf16.msra.mxu2 %v1568_v11  ;;  %v1560_v0 = vor.u32 %v1966_v56, %v1557_v50  ;;  %v1536_v11 = vor.u32 %v1960_v14, %v1533_v17  ;;  %v1519_v50 = vld [vmem:[#allocation7 + $0x30] sm:$0xf]  ;;  %v1957_v56 = vld [vmem:[#allocation7 + $0x34] sm:$0xf]  ;;  %v1955_v1 = vld [vmem:[#allocation7 + $0x20] sm:$0xf0] }
  0x6c   :  { %373 = vmatpush.bf16.msra.mxu1 %v1572_v53  ;;  %2076 = vmatpush.bf16.msra.mxu3 %v1572_v53  ;;  %v1958_v53 = vld [vmem:[#allocation7 + $0x38] sm:$0xf0]  ;;  %v1524_v7 = vor.u32 %v1957_v56, %v1521_v59  ;;  %v1509_v5 = vld [vmem:[#allocation7 + $0x24] sm:$0xf0]  ;;  %v1495_v6 = vld [vmem:[#allocation7] sm:$0xf] }
  0x6d   :  { %v1952_v9 = vld [vmem:[#allocation7 + $0x8] sm:$0xf0]  ;;  %v1951_v14 = vld [vmem:[#allocation7 + $0x4] sm:$0xf]  ;;  %v1497_v17 = vld [vmem:[#allocation7 + $0xc] sm:$0xf0] }
  0x6e   :  { %v1496_v56 = vor.u32 %v1952_v9, %v1495_v6  ;;  %v164_v59 = vld [vmem:[#allocation4 + $0x8] sm:$0xff]  ;;  %v1994_v6 = vld [vmem:[#allocation12 + $0x98] sm:$0xf0] }
  0x6f   :  { %345 = vmatpush.bf16.msra.mxu0 %v1556_v10  ;;  %2069 = vmatpush.bf16.msra.mxu2 %v1556_v10  ;;  %v1520_v10 = vor.u32 %v1958_v53, %v1519_v50  ;;  %v1974_v50 = vld [vmem:[#allocation7 + $0xb8] sm:$0xf0]  ;;  %v1675_v53 = vld [vmem:[#allocation12 + $0xa8] sm:$0xf]  ;;  %v2744_v62 = vpack.c.bf16 %v164_v59, %v163_v23  ;;  %v1995_v23 = vld [vmem:[#allocation12 + $0xa0] sm:$0xf0] }
  0x70   :  { %374 = vmatpush.bf16.msra.mxu1 %v1560_v0  ;;  %2077 = vmatpush.bf16.msra.mxu3 %v1560_v0  ;;  %v1507_v0 = vld [vmem:[#allocation7 + $0x18] sm:$0xf] }
  0x73   :  { %346 = vmatpush.bf16.msra.mxu0 %v1544_v3  ;;  %2070 = vmatpush.bf16.msra.mxu2 %v1544_v3  ;;  %v1508_v3 = vor.u32 %v1955_v1, %v1507_v0  ;;  %v1677_v0 = vld [vmem:[#allocation12 + $0xb4] sm:$0xf0] }
  0x74   :  { %375 = vmatpush.bf16.msra.mxu1 %v1548_v2  ;;  %2078 = vmatpush.bf16.msra.mxu3 %v1548_v2  ;;  %v1512_v2 = vor.u32 %v1954_v4, %v1509_v5  ;;  %v1683_v5 = vld [vmem:[#allocation12 + $0xb0] sm:$0xf] }
  0x75   :  { %v1684_v9 = vor.u32 %v1998_v15, %v1683_v5  ;;  %v1965_v5 = vld [vmem:[#allocation7 + $0x70] sm:$0xf0] }
  0x77   :  { %347 = vmatpush.bf16.msra.mxu0 %v1532_v8  ;;  %2071 = vmatpush.bf16.msra.mxu2 %v1532_v8  ;;  %v1587_v8 = vld [vmem:[#allocation7 + $0xb0] sm:$0xf] }
  0x78   :  { %376 = vmatpush.bf16.msra.mxu1 %v1536_v11  ;;  %2079 = vmatpush.bf16.msra.mxu3 %v1536_v11  ;;  %v1997_v11 = vld [vmem:[#allocation12 + $0xb0] sm:$0xf0]  ;;  %v1588_v1 = vor.u32 %v1974_v50, %v1587_v8  ;;  %v1576_v8 = vor.u32 %v1971_v13, %v1575_v54  ;;  %v1990_v13 = vld [vmem:[#allocation12 + $0x7c] sm:$0xf]  ;;  %v1653_v54 = vld [vmem:[#allocation12 + $0x84] sm:$0xf0] }
  0x79   :  { %v1676_v4 = vor.u32 %v1997_v11, %v1675_v53  ;;  %v1671_v53 = vld [vmem:[#allocation12 + $0x98] sm:$0xf]  ;;  %v1563_v11 = vld [vmem:[#allocation7 + $0x80] sm:$0xf]  ;;  %v1656_v29 = vor.u32 %v1990_v13, %v1653_v54  ;;  %v1984_v13 = vld [vmem:[#allocation12 + $0x4c] sm:$0xf] }
  0x7a   :  { %v1672_v59 = vor.u32 %v1995_v23, %v1671_v53  ;;  %v165_v53 = vld [vmem:[#allocation4 + $0x10] sm:$0xff]  ;;  %v1629_v54 = vld [vmem:[#allocation12 + $0x54] sm:$0xf0] }
  0x7b   :  { %348 = vmatpush.bf16.msra.mxu0 %v1520_v10  ;;  %2072 = vmatpush.bf16.msra.mxu2 %v1520_v10  ;;  %v1500_v10 = vor.u32 %v1951_v14, %v1497_v17  ;;  %v1993_v14 = vld [vmem:[#allocation12 + $0x94] sm:$0xf]  ;;  %v1665_v17 = vld [vmem:[#allocation12 + $0x9c] sm:$0xf0]  ;;  %v1539_v23 = vld [vmem:[#allocation7 + $0x50] sm:$0xf] }
  0x7c   :  { %377 = vmatpush.bf16.msra.mxu1 %v1524_v7  ;;  %2080 = vmatpush.bf16.msra.mxu3 %v1524_v7  ;;  %v1996_v7 = vld [vmem:[#allocation12 + $0xac] sm:$0xf]  ;;  %v1668_v15 = vor.u32 %v1993_v14, %v1665_v17  ;;  %v1647_v14 = vld [vmem:[#allocation12 + $0x68] sm:$0xf] }
  0x7f   :  { %349 = vmatpush.bf16.msra.mxu0 %v1508_v3  ;;  %2073 = vmatpush.bf16.msra.mxu2 %v1508_v3  ;;  %v1663_v3 = vld [vmem:[#allocation12 + $0x90] sm:$0xf] }
  0x80   :  { %378 = vmatpush.bf16.msra.mxu1 %v1512_v2  ;;  %2081 = vmatpush.bf16.msra.mxu3 %v1512_v2  ;;  %v1680_v2 = vor.u32 %v1996_v7, %v1677_v0  ;;  %v1664_v50 = vor.u32 %v1994_v6, %v1663_v3  ;;  %v1659_v0 = vld [vmem:[#allocation12 + $0x80] sm:$0xf]  ;;  %v1988_v6 = vld [vmem:[#allocation12 + $0x68] sm:$0xf0] }
  0x81   :  { %v1639_v3 = vld [vmem:[#allocation12 + $0x60] sm:$0xf] }
  0x83   :  { %350 = vmatpush.bf16.msra.mxu0 %v1496_v56  ;;  %2074 = vmatpush.bf16.msra.mxu2 %v1496_v56  ;;  %v1991_v56 = vld [vmem:[#allocation12 + $0x80] sm:$0xf0] }
  0x84   :  { %379 = vmatpush.bf16.msra.mxu1 %v1500_v10  ;;  %2082 = vmatpush.bf16.msra.mxu3 %v1500_v10  ;;  %v1564_v10 = vor.u32 %v1968_v12, %v1563_v11  ;;  %v1652_v7 = vor.u32 %v1991_v56, %v1651_v20  ;;  %v1962_v11 = vld [vmem:[#allocation7 + $0x58] sm:$0xf0]  ;;  %v1627_v12 = vld [vmem:[#allocation12 + $0x48] sm:$0xf]  ;;  %v1985_v20 = vld [vmem:[#allocation12 + $0x50] sm:$0xf0] }
  0x85   :  { %v166_v56 = vld [vmem:[#allocation4 + $0x18] sm:$0xff] }
  0x86   :  { %351 = vmatmul.bf16.vlgmr.msra.gmra.mxu0 %v2744_v62  ;;  %361 = vmatmul.bf16.vlgmr.msra.gmra.mxu2 %v2746_v16 }
  0x87   :  { %401 = vmatpush.bf16.msrb.mxu2 %v1588_v1  ;;  %380 = vmatmul.bf16.vlgmr.msra.gmra.mxu1 %v2744_v62  ;;  %v1992_v1 = vld [vmem:[#allocation12 + $0x88] sm:$0xf0] }
  0x88   :  { %622 = vmatpush.bf16.msrb.mxu3 %v1676_v4  ;;  %651 = vmatpush.bf16.msrb.mxu0 %v1680_v2  ;;  %v1551_v4 = vld [vmem:[#allocation7 + $0x68] sm:$0xf]  ;;  %v1660_v26 = vor.u32 %v1992_v1, %v1659_v0  ;;  %v1635_v0 = vld [vmem:[#allocation12 + $0x50] sm:$0xf]  ;;  %v1986_v1 = vld [vmem:[#allocation12 + $0x58] sm:$0xf0] }
  0x89   :  { %390 = vmatmul.bf16.vlgmr.msra.gmra.mxu3 %v2746_v16  ;;  %680 = vmatpush.bf16.msrb.mxu1 %v1684_v9  ;;  %v1987_v2 = vld [vmem:[#allocation12 + $0x64] sm:$0xf]  ;;  %v1641_v9 = vld [vmem:[#allocation12 + $0x6c] sm:$0xf0]  ;;  %v1552_v17 = vor.u32 %v1965_v5, %v1551_v4  ;;  %v1527_v4 = vld [vmem:[#allocation7 + $0x38] sm:$0xf]  ;;  %v2752_v5 = vpack.c.bf16 %v166_v56, %v165_v53 }
  0x8a   :  { %v1979_v53 = vld [vmem:[#allocation12 + $0x20] sm:$0xf0] }
  0x8b   :  { %402 = vmatpush.bf16.msrb.mxu2 %v1576_v8  ;;  %v1640_v8 = vor.u32 %v1988_v6, %v1639_v3  ;;  %v2754_v3 = vpack.c.bf16 %v170_v21, %v169_v18  ;;  %v1959_v6 = vld [vmem:[#allocation7 + $0x40] sm:$0xf0]  ;;  %v1956_v18 = vld [vmem:[#allocation7 + $0x28] sm:$0xf0]  ;;  %v1603_v21 = vld [vmem:[#allocation12 + $0x18] sm:$0xf] }
  0x8c   :  { %623 = vmatpush.bf16.msrb.mxu3 %v1664_v50  ;;  %652 = vmatpush.bf16.msrb.mxu0 %v1668_v15  ;;  %v1989_v50 = vld [vmem:[#allocation12 + $0x70] sm:$0xf0]  ;;  %v1644_v15 = vor.u32 %v1987_v2, %v1641_v9  ;;  %v1617_v9 = vld [vmem:[#allocation12 + $0x3c] sm:$0xf0]  ;;  %v1604_v56 = vor.u32 %v1979_v53, %v1603_v21 }
  0x8d   :  { %681 = vmatpush.bf16.msrb.mxu1 %v1672_v59  ;;  %v1648_v59 = vor.u32 %v1989_v50, %v1647_v14  ;;  %v1981_v2 = vld [vmem:[#allocation12 + $0x34] sm:$0xf]  ;;  %v1528_v14 = vor.u32 %v1959_v6, %v1527_v4  ;;  %v1983_v50 = vld [vmem:[#allocation12 + $0x40] sm:$0xf0] }
  0x8e   :  { %v1975_v4 = vld [vmem:[#allocation12 + $0x4] sm:$0xf] }
  0x8f   :  { %403 = vmatpush.bf16.msrb.mxu2 %v1564_v10  ;;  %v1540_v10 = vor.u32 %v1962_v11, %v1539_v23  ;;  %v1515_v23 = vld [vmem:[#allocation7 + $0x20] sm:$0xf]  ;;  %v1620_v11 = vor.u32 %v1981_v2, %v1617_v9  ;;  %v1599_v2 = vld [vmem:[#allocation12 + $0x8] sm:$0xf]  ;;  %v1977_v9 = vld [vmem:[#allocation12 + $0x10] sm:$0xf0] }
  0x90   :  { %624 = vmatpush.bf16.msrb.mxu3 %v1652_v7  ;;  %653 = vmatpush.bf16.msrb.mxu0 %v1656_v29  ;;  %v1628_v7 = vor.u32 %v1985_v20, %v1627_v12  ;;  %v1636_v29 = vor.u32 %v1986_v1, %v1635_v0  ;;  %v1978_v20 = vld [vmem:[#allocation12 + $0x1c] sm:$0xf] }
  0x91   :  { %682 = vmatpush.bf16.msrb.mxu1 %v1660_v26  ;;  %v1632_v26 = vor.u32 %v1984_v13, %v1629_v54  ;;  %v1503_v13 = vld [vmem:[#allocation7 + $0x8] sm:$0xf]  ;;  %v1953_v54 = vld [vmem:[#allocation7 + $0x10] sm:$0xf0] }
  0x92   :  { %v1504_v6 = vor.u32 %v1953_v54, %v1503_v13 }
  0x93   :  { %404 = vmatpush.bf16.msrb.mxu2 %v1552_v17  ;;  %v1616_v17 = vor.u32 %v1982_v52, %v1615_v60  ;;  %v1605_v52 = vld [vmem:[#allocation12 + $0x24] sm:$0xf0]  ;;  %v1516_v60 = vor.u32 %v1956_v18, %v1515_v23 }
  0x94   :  { %625 = vmatpush.bf16.msrb.mxu3 %v1640_v8  ;;  %654 = vmatpush.bf16.msrb.mxu0 %v1644_v15  ;;  %v1623_v8 = vld [vmem:[#allocation12 + $0x38] sm:$0xf]  ;;  %v1611_v15 = vld [vmem:[#allocation12 + $0x20] sm:$0xf]  ;;  %v1608_v0 = vor.u32 %v1978_v20, %v1605_v52 }
  0x95   :  { %683 = vmatpush.bf16.msrb.mxu1 %v1648_v59  ;;  %v1624_v12 = vor.u32 %v1983_v50, %v1623_v8  ;;  %v1980_v59 = vld [vmem:[#allocation12 + $0x28] sm:$0xf0] }
  0x96   :  { %356 = vmatmul.bf16.gmra.mxu0 %v2752_v5  ;;  %366 = vmatmul.bf16.gmra.mxu2 %v2754_v3  ;;  %v1612_v1 = vor.u32 %v1980_v59, %v1611_v15 }
  0x97   :  { %405 = vmatpush.bf16.msrb.mxu2 %v1540_v10  ;;  %385 = vmatmul.bf16.gmra.mxu1 %v2752_v5  ;;  %v1591_v10 = vld [vmem:[#allocation12] sm:$0xf] }
  0x98   :  { %626 = vmatpush.bf16.msrb.mxu3 %v1628_v7  ;;  %655 = vmatpush.bf16.msrb.mxu0 %v1632_v26  ;;  %v1976_v7 = vld [vmem:[#allocation12 + $0x8] sm:$0xf0] }
  0x99   :  { %395 = vmatmul.bf16.gmra.mxu3 %v2754_v3  ;;  %684 = vmatpush.bf16.msrb.mxu1 %v1636_v29  ;;  %v1592_v26 = vor.u32 %v1976_v7, %v1591_v10  ;;  %v1593_v29 = vld [vmem:[#allocation12 + $0xc] sm:$0xf0] }
  0x9b   :  { %406 = vmatpush.bf16.msrb.mxu2 %v1528_v14  ;;  %v1596_v14 = vor.u32 %v1975_v4, %v1593_v29 }
  0x9c   :  { %627 = vmatpush.bf16.msrb.mxu3 %v1616_v17  ;;  %656 = vmatpush.bf16.msrb.mxu0 %v1620_v11  ;;  %v1600_v17 = vor.u32 %v1977_v9, %v1599_v2 }
  0x9d   :  { %685 = vmatpush.bf16.msrb.mxu1 %v1624_v12 }
  0x9f   :  { %407 = vmatpush.bf16.msrb.mxu2 %v1516_v60 }
  0xa0   :  { %628 = vmatpush.bf16.msrb.mxu3 %v1604_v56  ;;  %657 = vmatpush.bf16.msrb.mxu0 %v1608_v0 }
  0xa1   :  { %686 = vmatpush.bf16.msrb.mxu1 %v1612_v1 }
  0xa3   :  { %408 = vmatpush.bf16.msrb.mxu2 %v1504_v6 }
  0xa4   :  { %629 = vmatpush.bf16.msrb.mxu3 %v1592_v26  ;;  %658 = vmatpush.bf16.msrb.mxu0 %v1596_v14 }
  0xa5   :  { %687 = vmatpush.bf16.msrb.mxu1 %v1600_v17  ;;  %v486_v17 = vld [vmem:[%s3001_s7] sm:$0x7]  ;;  %s2823_s7 = smov 0  }
  0xa6   :  { %409 = vmatmul.bf16.vlgmr.msrb.gmra.mxu2 %v2744_v62 }
  0xa7   :  { %659 = vmatmul.bf16.vlgmr.msrb.gmra.mxu0 %v2744_v62 }
  0xa8   :  { %688 = vmatmul.bf16.vlgmr.msrb.gmra.mxu1 %v2744_v62 }
  0xa9   :  { %630 = vmatmul.bf16.vlgmr.msrb.gmra.mxu3 %v2744_v62  ;;  %v207_v62 = vld [vmem:[#allocation10] sm:$0x7] }
  0xaa   :  { %v209_v8 = vperm.slane %v207_v62, 0  ;;  %v210_v50 = vperm.slane %v207_v62, 1 }
  0xb6   :  { %414 = vmatmul.bf16.gmra.mxu2 %v2752_v5 }
  0xb7   :  { %664 = vmatmul.bf16.gmra.mxu0 %v2752_v5 }
  0xb8   :  { %693 = vmatmul.bf16.gmra.mxu1 %v2752_v5 }
  0xb9   :  { %635 = vmatmul.bf16.gmra.mxu3 %v2752_v5 }
  0xc6   :  { %419 = vmatmul.bf16.gmra.mxu2 %v2746_v16 }
  0xc7   :  { %669 = vmatmul.bf16.gmra.mxu0 %v2746_v16 }
  0xc8   :  { %698 = vmatmul.bf16.gmra.mxu1 %v2746_v16 }
  0xc9   :  { %640 = vmatmul.bf16.gmra.mxu3 %v2746_v16 }
  0xd6   :  { %424 = vmatmul.bf16.gmra.mxu2 %v2754_v3 }
  0xd7   :  { %674 = vmatmul.bf16.gmra.mxu0 %v2754_v3 }
  0xd8   :  { %703 = vmatmul.bf16.gmra.mxu1 %v2754_v3 }
  0xd9   :  { %645 = vmatmul.bf16.gmra.mxu3 %v2754_v3 }
 0x103   :  { %v352_v5 = vpop.f32.mrf.mxu0 }
 0x104   :  { %v353_v23 = vadd.f32 %v352_v5, %v209_v8  ;;  %v381_v18 = vpop.f32.mrf.mxu1 }
 0x105   :  { %v382_v21 = vadd.f32 %v381_v18, %v210_v50 }
 0x106   :  { %430 = vst [vmem:[#allocation2] sm:$0xff] %v353_v23  ;;  %v2779_v23 = vperm.slane %v486_v17, 1 }
 0x107   :  { %431 = vst [vmem:[#allocation2 + $0x8] sm:$0xff] %v382_v21 }
 0x109   :  { %v362_v53 = vpop.f32.mrf.mxu2 }
 0x10a   :  { %v363_v11 = vadd.f32 %v362_v53, %v209_v8  ;;  %v2781_v53 = vperm.slane %v486_v17, 2 }
 0x10b   :  { %v354_v20 = vpop.f32.mrf.mxu0 }
 0x10c   :  { %v391_v16 = vpop.f32.mrf.mxu3  ;;  %442 = vst [vmem:[#allocation2 + $0x60] sm:$0xff] %v363_v11  ;;  %v355_v52 = vadd.f32 %v354_v20, %v209_v8  ;;  %v383_v60 = vpop.f32.mrf.mxu1 }
 0x10d   :  { %v392_v12 = vadd.f32 %v391_v16, %v210_v50  ;;  %v384_v56 = vadd.f32 %v383_v60, %v210_v50  ;;  %v2785_v60 = vperm.slane %v207_v62, 2 }
 0x10e   :  { %433 = vst [vmem:[#allocation2 + $0x18] sm:$0xff] %v355_v52 }
 0x10f   :  { %443 = vst [vmem:[#allocation2 + $0x68] sm:$0xff] %v392_v12 }
 0x110   :  { %434 = vst [vmem:[#allocation2 + $0x20] sm:$0xff] %v384_v56  ;;  %v2787_v56 = vperm.slane %v486_v17, 0 }
 0x111   :  { %v364_v3 = vpop.f32.mrf.mxu2 }
 0x112   :  { %v365_v15 = vadd.f32 %v364_v3, %v209_v8 }
 0x113   :  { %v357_v54 = vpop.f32.mrf.mxu0 }
 0x114   :  { %v393_v59 = vpop.f32.mrf.mxu3  ;;  %445 = vst [vmem:[#allocation2 + $0x78] sm:$0xff] %v365_v15  ;;  %v358_v10 = vadd.f32 %v357_v54, %v209_v8  ;;  %v386_v7 = vpop.f32.mrf.mxu1 }
 0x115   :  { %v394_v13 = vadd.f32 %v393_v59, %v210_v50  ;;  %v387_v0 = vadd.f32 %v386_v7, %v210_v50 }
 0x116   :  { %436 = vst [vmem:[#allocation2 + $0x30] sm:$0xff] %v358_v10 }
 0x117   :  { %446 = vst [vmem:[#allocation2 + $0x80] sm:$0xff] %v394_v13 }
 0x118   :  { %437 = vst [vmem:[#allocation2 + $0x38] sm:$0xff] %v387_v0 }
 0x119   :  { %v367_v1 = vpop.f32.mrf.mxu2 }
 0x11a   :  { %v368_v4 = vadd.f32 %v367_v1, %v209_v8 }
 0x11b   :  { %v359_v29 = vpop.f32.mrf.mxu0 }
 0x11c   :  { %v396_v6 = vpop.f32.mrf.mxu3  ;;  %448 = vst [vmem:[#allocation2 + $0x90] sm:$0xff] %v368_v4  ;;  %v360_v2 = vadd.f32 %v359_v29, %v209_v8  ;;  %v388_v9 = vpop.f32.mrf.mxu1 }
 0x11d   :  { %v397_v26 = vadd.f32 %v396_v6, %v210_v50  ;;  %v389_v14 = vadd.f32 %v388_v9, %v210_v50 }
 0x11e   :  { %439 = vst [vmem:[#allocation2 + $0x48] sm:$0xff] %v360_v2 }
 0x11f   :  { %449 = vst [vmem:[#allocation2 + $0x98] sm:$0xff] %v397_v26 }
 0x120   :  { %440 = vst [vmem:[#allocation2 + $0x50] sm:$0xff] %v389_v14 }
 0x121   :  { %v369_v5 = vpop.f32.mrf.mxu2 }
 0x122   :  { %v370_v18 = vadd.f32 %v369_v5, %v209_v8 }
 0x124   :  { %v398_v21 = vpop.f32.mrf.mxu3  ;;  %451 = vst [vmem:[#allocation2 + $0xa8] sm:$0xff] %v370_v18  ;;  %v660_v16 = vpop.f32.mrf.mxu0 }
 0x125   :  { %v399_v11 = vadd.f32 %v398_v21, %v210_v50  ;;  %v661_v12 = vadd.f32 %v660_v16, %v2779_v23  ;;  %v689_v20 = vpop.f32.mrf.mxu1 }
 0x126   :  { %v690_v52 = vadd.f32 %v689_v20, %v2781_v53 }
 0x127   :  { %452 = vst [vmem:[#allocation2 + $0xb0] sm:$0xff] %v399_v11 }
 0x128   :  { %710 = vst [vmem:[#allocation3 + $0x8] sm:$0xff] %v661_v12 }
 0x129   :  { %711 = vst [vmem:[#allocation3 + $0x10] sm:$0xff] %v690_v52  ;;  %v410_v3 = vpop.f32.mrf.mxu2 }
 0x12a   :  { %v411_v8 = vadd.f32 %v410_v3, %v2785_v60 }
 0x12c   :  { %v631_v15 = vpop.f32.mrf.mxu3  ;;  %432 = vst [vmem:[#allocation2 + $0x10] sm:$0xff] %v411_v8  ;;  %v662_v59 = vpop.f32.mrf.mxu0 }
 0x12d   :  { %v632_v50 = vadd.f32 %v631_v15, %v2787_v56  ;;  %v663_v13 = vadd.f32 %v662_v59, %v2779_v23  ;;  %v691_v54 = vpop.f32.mrf.mxu1 }
 0x12e   :  { %v692_v10 = vadd.f32 %v691_v54, %v2781_v53 }
 0x12f   :  { %709 = vst [vmem:[#allocation3] sm:$0xff] %v632_v50 }
 0x130   :  { %713 = vst [vmem:[#allocation3 + $0x20] sm:$0xff] %v663_v13 }
 0x131   :  { %714 = vst [vmem:[#allocation3 + $0x28] sm:$0xff] %v692_v10  ;;  %v412_v62 = vpop.f32.mrf.mxu2 }
 0x132   :  { %v413_v7 = vadd.f32 %v412_v62, %v2785_v60 }
 0x134   :  { %v633_v0 = vpop.f32.mrf.mxu3  ;;  %435 = vst [vmem:[#allocation2 + $0x28] sm:$0xff] %v413_v7  ;;  %v665_v4 = vpop.f32.mrf.mxu0 }
 0x135   :  { %v634_v1 = vadd.f32 %v633_v0, %v2787_v56  ;;  %v666_v6 = vadd.f32 %v665_v4, %v2779_v23  ;;  %v694_v26 = vpop.f32.mrf.mxu1 }
 0x136   :  { %v695_v29 = vadd.f32 %v694_v26, %v2781_v53 }
 0x137   :  { %712 = vst [vmem:[#allocation3 + $0x18] sm:$0xff] %v634_v1 }
 0x138   :  { %716 = vst [vmem:[#allocation3 + $0x38] sm:$0xff] %v666_v6 }
 0x139   :  { %717 = vst [vmem:[#allocation3 + $0x40] sm:$0xff] %v695_v29  ;;  %v415_v2 = vpop.f32.mrf.mxu2 }
 0x13a   :  { %v416_v9 = vadd.f32 %v415_v2, %v2785_v60 }
 0x13c   :  { %v636_v14 = vpop.f32.mrf.mxu3  ;;  %438 = vst [vmem:[#allocation2 + $0x40] sm:$0xff] %v416_v9  ;;  %v667_v5 = vpop.f32.mrf.mxu0 }
 0x13d   :  { %v637_v17 = vadd.f32 %v636_v14, %v2787_v56  ;;  %v668_v18 = vadd.f32 %v667_v5, %v2779_v23  ;;  %v696_v21 = vpop.f32.mrf.mxu1 }
 0x13e   :  { %v697_v11 = vadd.f32 %v696_v21, %v2781_v53 }
 0x13f   :  { %715 = vst [vmem:[#allocation3 + $0x30] sm:$0xff] %v637_v17 }
 0x140   :  { %719 = vst [vmem:[#allocation3 + $0x50] sm:$0xff] %v668_v18 }
 0x141   :  { %720 = vst [vmem:[#allocation3 + $0x58] sm:$0xff] %v697_v11  ;;  %v417_v16 = vpop.f32.mrf.mxu2 }
 0x142   :  { %v418_v12 = vadd.f32 %v417_v16, %v2785_v60 }
 0x144   :  { %v638_v20 = vpop.f32.mrf.mxu3  ;;  %441 = vst [vmem:[#allocation2 + $0x58] sm:$0xff] %v418_v12  ;;  %v670_v3 = vpop.f32.mrf.mxu0 }
 0x145   :  { %v639_v52 = vadd.f32 %v638_v20, %v2787_v56  ;;  %v671_v8 = vadd.f32 %v670_v3, %v2779_v23  ;;  %v699_v15 = vpop.f32.mrf.mxu1 }
 0x146   :  { %v700_v50 = vadd.f32 %v699_v15, %v2781_v53 }
 0x147   :  { %718 = vst [vmem:[#allocation3 + $0x48] sm:$0xff] %v639_v52 }
 0x148   :  { %722 = vst [vmem:[#allocation3 + $0x68] sm:$0xff] %v671_v8 }
 0x149   :  { %723 = vst [vmem:[#allocation3 + $0x70] sm:$0xff] %v700_v50  ;;  %v420_v59 = vpop.f32.mrf.mxu2 }
 0x14a   :  { %v421_v13 = vadd.f32 %v420_v59, %v2785_v60  ;;  %v2819_v59 = vmov 0.0  }
 0x14c   :  { %v641_v54 = vpop.f32.mrf.mxu3  ;;  %444 = vst [vmem:[#allocation2 + $0x70] sm:$0xff] %v421_v13  ;;  %v672_v62 = vpop.f32.mrf.mxu0  ;;  %v2821_v13 = vmov 0.0  }
 0x14d   :  { %v642_v10 = vadd.f32 %v641_v54, %v2787_v56  ;;  %v673_v7 = vadd.f32 %v672_v62, %v2779_v23  ;;  %v701_v0 = vpop.f32.mrf.mxu1 }
 0x14e   :  { %v702_v1 = vadd.f32 %v701_v0, %v2781_v53 }
 0x14f   :  { %721 = vst [vmem:[#allocation3 + $0x60] sm:$0xff] %v642_v10 }
 0x150   :  { %725 = vst [vmem:[#allocation3 + $0x80] sm:$0xff] %v673_v7 }
 0x151   :  { %726 = vst [vmem:[#allocation3 + $0x88] sm:$0xff] %v702_v1  ;;  %v422_v4 = vpop.f32.mrf.mxu2 }
 0x152   :  { %v423_v6 = vadd.f32 %v422_v4, %v2785_v60 }
 0x154   :  { %v643_v26 = vpop.f32.mrf.mxu3  ;;  %447 = vst [vmem:[#allocation2 + $0x88] sm:$0xff] %v423_v6  ;;  %v675_v2 = vpop.f32.mrf.mxu0 }
 0x155   :  { %v644_v29 = vadd.f32 %v643_v26, %v2787_v56  ;;  %v676_v9 = vadd.f32 %v675_v2, %v2779_v23  ;;  %v704_v14 = vpop.f32.mrf.mxu1 }
 0x156   :  { %v705_v17 = vadd.f32 %v704_v14, %v2781_v53 }
 0x157   :  { %724 = vst [vmem:[#allocation3 + $0x78] sm:$0xff] %v644_v29 }
 0x158   :  { %728 = vst [vmem:[#allocation3 + $0x98] sm:$0xff] %v676_v9 }
 0x159   :  { %729 = vst [vmem:[#allocation3 + $0xa0] sm:$0xff] %v705_v17  ;;  %v425_v5 = vpop.f32.mrf.mxu2 }
 0x15a   :  { %v426_v18 = vadd.f32 %v425_v5, %v2785_v60 }
 0x15c   :  { %v646_v21 = vpop.f32.mrf.mxu3  ;;  %450 = vst [vmem:[#allocation2 + $0xa0] sm:$0xff] %v426_v18  ;;  %v677_v16 = vpop.f32.mrf.mxu0 }
 0x15d   :  { %v647_v11 = vadd.f32 %v646_v21, %v2787_v56  ;;  %v678_v12 = vadd.f32 %v677_v16, %v2779_v23  ;;  %v706_v20 = vpop.f32.mrf.mxu1 }
 0x15e   :  { %v707_v52 = vadd.f32 %v706_v20, %v2781_v53 }
 0x15f   :  { %727 = vst [vmem:[#allocation3 + $0x90] sm:$0xff] %v647_v11 }
 0x160   :  { %731 = vst [vmem:[#allocation3 + $0xb0] sm:$0xff] %v678_v12 }
 0x161   :  { %732 = vst [vmem:[#allocation3 + $0xb8] sm:$0xff] %v707_v52  ;;  %v427_v3 = vpop.f32.mrf.mxu2 }
 0x162   :  { %v428_v8 = vadd.f32 %v427_v3, %v2785_v60 }
 0x164   :  { %v648_v15 = vpop.f32.mrf.mxu3  ;;  %453 = vst [vmem:[#allocation2 + $0xb8] sm:$0xff] %v428_v8 }
 0x165   :  { %v649_v50 = vadd.f32 %v648_v15, %v2787_v56 }
 0x167   :  { %730 = vst [vmem:[#allocation3 + $0xa8] sm:$0xff] %v649_v50 }
 0x168 LB: > { %v1773_v23 = vor.u32 %v2637_v46, %v2631_v43  ;;  %v1872_v53 = vor.u32 %v2738_v61, %v2732_v55  ;;  %v1777_v60 = vor.u32 %v2629_v42, %v2635_v45  ;;  %v1761_v56 = vor.u32 %v2625_v40, %v2619_v37  ;;  %v3077_v19 = vld [vmem:[#allocation47_spill] sm:$0xff]  ;;  %v3078_v22 = vld [vmem:[#allocation50_spill] sm:$0xff]  ;;  %v3080_v17 = vld [vmem:[#allocation77_spill] sm:$0xff]  ;;  %s2047_s6 = smul.u32 24, %s2424_s7  ;;  %s807_s24 = ssub.s32 7, %s2424_s7  ;;  %s2424_s7 = sphi %s2823_s7, %s804_s7   ;;  %v2420_v13 = vphi %v2821_v13, %v3149_v13   ;;  %v2416_v59 = vphi %v2819_v59, %v3148_v59  }
 0x169   : > { %v1860_v54 = vor.u32 %v2726_v49, %v2720_v48  ;;  %v1765_v10 = vor.u32 %v2617_v36, %v2623_v39  ;;  %v1781_v62 = vor.u32 %v2639_v47, %v2633_v44  ;;  %v1749_v7 = vor.u32 %v2613_v34, %v2607_v31  ;;  %v3079_v14 = vld [vmem:[#allocation74_spill] sm:$0xff]  ;;  %v3081_v18 = vld [vmem:[#allocation49_spill] sm:$0xff]  ;;  %v3083_v16 = vld [vmem:[#allocation52_spill] sm:$0xff]  ;;  %s2048_s25 = smul.u32 24, %s807_s24  ;;  %s2049_s27 = sshll.u32 %s2424_s7, 4 }
 0x16a   : > { %950 = vmatpush.bf16.msra.mxu0 %v1773_v23  ;;  %1178 = vmatpush.bf16.msra.mxu3 %v1872_v53  ;;  %v1848_v0 = vor.u32 %v2714_v58, %v2708_v57  ;;  %v1753_v1 = vor.u32 %v2605_v30, %v2611_v33  ;;  %v1769_v4 = vor.u32 %v2627_v41, %v2621_v38  ;;  %v3082_v21 = vld [vmem:[#allocation46_spill] sm:$0xff]  ;;  %v3084_v12 = vld [vmem:[#allocation53_spill] sm:$0xff]  ;;  %v3086_v3 = vld [vmem:[#allocation44_spill] sm:$0xff]  ;;  %s2940_s26 = scalar_lea.vmem [#allocation2], %s2047_s6  ;;  %s1266_s28 = scalar_lea.vmem [#allocation18], %s2049_s27 }
 0x16b   : > { %963 = vmatpush.bf16.msra.mxu1 %v1777_v60  ;;  %976 = vmatpush.bf16.msra.mxu2 %v1781_v62  ;;  %v1737_v6 = vor.u32 %v2601_v28, %v2595_v25  ;;  %v1836_v26 = vor.u32 %v2702_v51, %v2696_v63  ;;  %v1741_v29 = vor.u32 %v2593_v24, %v2599_v27  ;;  %v3085_v52 = vld [vmem:[#allocation41_spill] sm:$0xff]  ;;  %v3087_v15 = vld [vmem:[#allocation68_spill] sm:$0xff]  ;;  %v3088_v50 = vld [vmem:[#allocation71_spill] sm:$0xff]  ;;  %s2945_s0 = scalar_lea.vmem [#allocation3], %s2048_s25  ;;  %s2050_s13 = sshll.u32 %s807_s24, 4 }
 0x16c   : > { %v1757_v2 = vor.u32 %v2615_v35, %v2609_v32  ;;  %v1725_v9 = vor.u32 %v3078_v22, %v3077_v19  ;;  %v1824_v5 = vor.u32 %v3080_v17, %v3079_v14  ;;  %v1729_v11 = vor.u32 %v3082_v21, %v3081_v18  ;;  %v3089_v53 = vld [vmem:[#allocation43_spill] sm:$0xff]  ;;  %v3090_v60 = vld [vmem:[#allocation40_spill] sm:$0xff]  ;;  %v3099_v14 = vld [vmem:[#allocation42_spill] sm:$0xff]  ;;  %s1270_s14 = scalar_lea.vmem [#allocation18], %s2050_s13  ;;  %s804_s7 = sadd.s32 1, %s2424_s7  }
 0x16d   : > { %v1745_v20 = vor.u32 %v3084_v12, %v3083_v16  ;;  %v1713_v8 = vor.u32 %v3086_v3, %v3085_v52  ;;  %v1812_v23 = vor.u32 %v3088_v50, %v3087_v15  ;;  %v3100_v17 = vld [vmem:[#allocation45_spill] sm:$0xff]  ;;  %v3102_v21 = vld [vmem:[#allocation32_spill] sm:$0xff]  ;;  %v3104_v12 = vld [vmem:[#allocation59_spill] sm:$0xff]  ;;  %p801_p0 = scmp.ge.s32.totalorder %s804_s7, 8  }
 0x16e   : > { %951 = vmatpush.bf16.msra.mxu0 %v1761_v56  ;;  %1179 = vmatpush.bf16.msra.mxu3 %v1860_v54  ;;  %v1717_v56 = vor.u32 %v3090_v60, %v3089_v53  ;;  %v3091_v54 = vld [vmem:[#allocation48_spill] sm:$0xff]  ;;  %v3101_v18 = vld [vmem:[#allocation29_spill] sm:$0xff]  ;;  %v3106_v3 = vld [vmem:[#allocation91_spill] sm:$0xff]  ;;  %s2440_s15 = smov (%p801_p0), [#allocation18]   ;;  %s1441_s18 = sshll.u32 (%p801_p0), %s3005_s11, 4  ;;  %s1442_s18 = int_to_ptr.hbm [resolvable:$true] %s1441_s18 }
 0x16f   : > { %964 = vmatpush.bf16.msra.mxu1 %v1765_v10  ;;  %977 = vmatpush.bf16.msra.mxu2 %v1769_v4  ;;  %v3092_v10 = vld [vmem:[#allocation51_spill] sm:$0xff]  ;;  %v3095_v4 = vld [vmem:[#allocation62_spill] sm:$0xff]  ;;  %v3103_v16 = vld [vmem:[#allocation56_spill] sm:$0xff]  ;;  %s1439_s1 = sshll.u32 (%p801_p0), %s2440_s15, 4  ;;  %s2441_s2 = smov (%p801_p0), 256   ;;  %s1440_s1 = int_to_ptr.vmem [resolvable:$true] %s1439_s1 }
 0x170   : > { %v1733_v62 = vor.u32 %v3092_v10, %v3091_v54  ;;  %v3105_v52 = vld [vmem:[#allocation93_spill] sm:$0xff]  ;;  %v3107_v15 = vld [vmem:[#allocation31_spill] sm:$0xff]  ;;  %v3108_v50 = vld [vmem:[#allocation28_spill] sm:$0xff]  ;;  %s2442_s3 = smov (%p801_p0), 16   ;;  %s2443_s20 = smov (%p801_p0), [#allocation19]  }
 0x171   : > { %v3109_v53 = vld [vmem:[#allocation92_spill] sm:$0xff]  ;;  %v3110_v60 = vld [vmem:[#allocation94_spill] sm:$0xff]  ;;  %v3112_v10 = vld [vmem:[#allocation39_spill] sm:$0xff]  ;;  %s1453_s21 = sshll.u32 (%p801_p0), %s2443_s20, 4  ;;  %s1455_s11 = sshll.u32 (%p801_p0), %s3006_s12, 4  ;;  %s1454_s21 = int_to_ptr.vmem [resolvable:$true] %s1453_s21  ;;  %s1456_s11 = int_to_ptr.hbm [resolvable:$true] %s1455_s11 }
 0x172   : > { %952 = vmatpush.bf16.msra.mxu0 %v1749_v7  ;;  %1180 = vmatpush.bf16.msra.mxu3 %v1848_v0  ;;  %v3093_v7 = vld [vmem:[#allocation35_spill] sm:$0xff]  ;;  %v3094_v0 = vld [vmem:[#allocation38_spill] sm:$0xff]  ;;  %v3111_v54 = vld [vmem:[#allocation36_spill] sm:$0xff] }
 0x173   : > { %965 = vmatpush.bf16.msra.mxu1 %v1753_v1  ;;  %978 = vmatpush.bf16.msra.mxu2 %v1757_v2  ;;  %v1701_v1 = vor.u32 %v3094_v0, %v3093_v7  ;;  %v3098_v2 = vld [vmem:[#allocation34_spill] sm:$0xff]  ;;  %v814_v7 = vpack.c.bf16 %v2420_v13, %v2420_v13  ;;  %v1042_v0 = vpack.c.bf16 %v2416_v59, %v2416_v59  ;;  %v2061_v24 = vld [vmem:[#allocation16 + $0x50] sm:$0xff] (%p801_p0)  ;;  %v2060_v27 = vld [vmem:[#allocation16 + $0x48] sm:$0xff] (%p801_p0) }
 0x174   :  { %v2053_v25 = vld [vmem:[#allocation16 + $0x10] sm:$0xff] (%p801_p0)  ;;  %v2052_v28 = vld [vmem:[#allocation16 + $0x8] sm:$0xff] (%p801_p0)  ;;  %v2059_v30 = vld [vmem:[#allocation16 + $0x40] sm:$0xff] (%p801_p0) }
 0x175   :  { %v2051_v31 = vld [vmem:[#allocation16] sm:$0xff] (%p801_p0)  ;;  %v2145_v34 = vld [vmem:[%s3004_s10] ss:$0 sm:$0xff] (%p801_p0) }
 0x176   : > { %953 = vmatpush.bf16.msra.mxu0 %v1737_v6  ;;  %1181 = vmatpush.bf16.msra.mxu3 %v1836_v26  ;;  %v3096_v6 = vld [vmem:[#allocation65_spill] sm:$0xff] }
 0x177   : > { %966 = vmatpush.bf16.msra.mxu1 %v1741_v29  ;;  %979 = vmatpush.bf16.msra.mxu2 %v1745_v20  ;;  %v1800_v26 = vor.u32 %v3096_v6, %v3095_v4  ;;  %v3097_v29 = vld [vmem:[#allocation37_spill] sm:$0xff]  ;;  %v1788_v20 = vor.u32 %v3104_v12, %v3103_v16  ;;  %v3114_v4 = vld [vmem:[#allocation87_spill] sm:$0xff]  ;;  %v3122_v16 = vld [vmem:[#allocation86_spill] sm:$0xff] }
 0x17a   : > { %954 = vmatpush.bf16.msra.mxu0 %v1725_v9  ;;  %1182 = vmatpush.bf16.msra.mxu3 %v1824_v5  ;;  %v1705_v9 = vor.u32 %v3098_v2, %v3097_v29  ;;  %v1721_v5 = vor.u32 %v3100_v17, %v3099_v14  ;;  %v3116_v29 = vld [vmem:[#allocation90_spill] sm:$0xff]  ;;  %v3118_v14 = vld [vmem:[#allocation33_spill] sm:$0xff] }
 0x17b   : > { %967 = vmatpush.bf16.msra.mxu1 %v1729_v11  ;;  %980 = vmatpush.bf16.msra.mxu2 %v1733_v62  ;;  %v1689_v11 = vor.u32 %v3102_v21, %v3101_v18  ;;  %v1709_v62 = vor.u32 %v3112_v10, %v3111_v54  ;;  %v3120_v18 = vld [vmem:[#allocation83_spill] sm:$0xff]  ;;  %v3130_v54 = vld [vmem:[#allocation78_spill] sm:$0xff] }
 0x17e   : > { %955 = vmatpush.bf16.msra.mxu0 %v1713_v8  ;;  %1183 = vmatpush.bf16.msra.mxu3 %v1812_v23  ;;  %v1876_v8 = vor.u32 %v3106_v3, %v3105_v52  ;;  %v1693_v23 = vor.u32 %v3108_v50, %v3107_v15  ;;  %v3124_v52 = vld [vmem:[#allocation79_spill] sm:$0xff]  ;;  %v3126_v15 = vld [vmem:[#allocation82_spill] sm:$0xff] }
 0x17f   : > { %968 = vmatpush.bf16.msra.mxu1 %v1717_v56  ;;  %981 = vmatpush.bf16.msra.mxu2 %v1721_v5  ;;  %v1880_v56 = vor.u32 %v3110_v60, %v3109_v53  ;;  %v3119_v5 = vld [vmem:[#allocation85_spill] sm:$0xff] }
 0x180   : > { %v1852_v21 = vor.u32 %v3120_v18, %v3119_v5  ;;  %v3128_v53 = vld [vmem:[#allocation73_spill] sm:$0xff]  ;;  %v3139_v18 = vld [vmem:[#allocation58_spill] sm:$0xff] }
 0x182   : > { %956 = vmatpush.bf16.msra.mxu0 %v1701_v1  ;;  %1184 = vmatpush.bf16.msra.mxu3 %v1800_v26  ;;  %v3113_v1 = vld [vmem:[#allocation89_spill] sm:$0xff]  ;;  %v3115_v26 = vld [vmem:[#allocation88_spill] sm:$0xff] }
 0x183   : > { %969 = vmatpush.bf16.msra.mxu1 %v1705_v9  ;;  %v1864_v6 = vor.u32 %v3114_v4, %v3113_v1  ;;  %v1868_v2 = vor.u32 %v3116_v29, %v3115_v26  ;;  %982 = vmatpush.bf16.msra.mxu2 %v1709_v62  ;;  %v3117_v9 = vld [vmem:[#allocation30_spill] sm:$0xff]  ;;  %v3132_v1 = vld [vmem:[#allocation67_spill] sm:$0xff]  ;;  %v3135_v29 = vld [vmem:[#allocation64_spill] sm:$0xff] }
 0x184   : > { %v1697_v17 = vor.u32 %v3118_v14, %v3117_v9  ;;  %v3131_v62 = vld [vmem:[#allocation70_spill] sm:$0xff]  ;;  %v3137_v14 = vld [vmem:[#allocation63_spill] sm:$0xff] }
 0x185   : > { %v1816_v4 = vor.u32 %v3132_v1, %v3131_v62 }
 0x186   : > { %957 = vmatpush.bf16.msra.mxu0 %v1689_v11  ;;  %1185 = vmatpush.bf16.msra.mxu3 %v1788_v20  ;;  %v3121_v11 = vld [vmem:[#allocation84_spill] sm:$0xff]  ;;  %v3123_v20 = vld [vmem:[#allocation81_spill] sm:$0xff] }
 0x187   : > { %970 = vmatpush.bf16.msra.mxu1 %v1693_v23  ;;  %v1856_v12 = vor.u32 %v3122_v16, %v3121_v11  ;;  %983 = vmatpush.bf16.msra.mxu2 %v1697_v17  ;;  %v1840_v3 = vor.u32 %v3124_v52, %v3123_v20  ;;  %v3127_v23 = vld [vmem:[#allocation76_spill] sm:$0xff]  ;;  %v3138_v17 = vld [vmem:[#allocation66_spill] sm:$0xff]  ;;  %v3141_v16 = vld [vmem:[#allocation57_spill] sm:$0xff] }
 0x188   : > { %v1828_v60 = vor.u32 %v3128_v53, %v3127_v23  ;;  %v1808_v5 = vor.u32 %v3138_v17, %v3137_v14  ;;  %v3143_v52 = vld [vmem:[#allocation54_spill] sm:$0xff]  ;;  %v812_v53 = vld [vmem:[%s2940_s26 + $0x8] sm:$0xff] }
 0x189   : > { %958 = vmatmul.bf16.vlgmr.msra.gmra.mxu0 %v814_v7  ;;  %1186 = vmatmul.bf16.vlgmr.msra.gmra.mxu3 %v1042_v0 }
 0x18a   : > { %1191 = vmatpush.bf16.msrb.mxu0 %v1876_v8  ;;  %971 = vmatmul.bf16.vlgmr.msra.gmra.mxu1 %v814_v7  ;;  %v3125_v8 = vld [vmem:[#allocation80_spill] sm:$0xff] }
 0x18b   : > { %1204 = vmatpush.bf16.msrb.mxu1 %v1880_v56  ;;  %984 = vmatmul.bf16.vlgmr.msra.gmra.mxu2 %v814_v7  ;;  %v1844_v50 = vor.u32 %v3126_v15, %v3125_v8  ;;  %v3129_v56 = vld [vmem:[#allocation75_spill] sm:$0xff]  ;;  %v3133_v7 = vld [vmem:[#allocation69_spill] sm:$0xff]  ;;  %v817_v8 = vperm.slane %v3143_v52, 1  ;;  %v811_v15 = vld [vmem:[%s2940_s26] sm:$0xff] }
 0x18c   : > { %v1832_v10 = vor.u32 %v3130_v54, %v3129_v56 }
 0x18e   : > { %1192 = vmatpush.bf16.msrb.mxu0 %v1864_v6  ;;  %v3134_v6 = vld [vmem:[#allocation72_spill] sm:$0xff] }
 0x18f   : > { %1205 = vmatpush.bf16.msrb.mxu1 %v1868_v2  ;;  %v1820_v26 = vor.u32 %v3134_v6, %v3133_v7  ;;  %v3136_v2 = vld [vmem:[#allocation61_spill] sm:$0xff] }
 0x190   : > { %v1804_v9 = vor.u32 %v3136_v2, %v3135_v29 }
 0x192   : > { %1193 = vmatpush.bf16.msrb.mxu0 %v1852_v21  ;;  %v3140_v21 = vld [vmem:[#allocation55_spill] sm:$0xff] }
 0x193   : > { %1206 = vmatpush.bf16.msrb.mxu1 %v1856_v12  ;;  %v1792_v11 = vor.u32 %v3140_v21, %v3139_v18  ;;  %v3142_v12 = vld [vmem:[#allocation60_spill] sm:$0xff] }
 0x194   : > { %v1796_v20 = vor.u32 %v3142_v12, %v3141_v16 }
 0x196   : > { %1194 = vmatpush.bf16.msrb.mxu0 %v1840_v3  ;;  %v816_v3 = vperm.slane %v3143_v52, 0 }
 0x197   : > { %1207 = vmatpush.bf16.msrb.mxu1 %v1844_v50 }
 0x19a   : > { %1195 = vmatpush.bf16.msrb.mxu0 %v1828_v60 }
 0x19b   : > { %1208 = vmatpush.bf16.msrb.mxu1 %v1832_v10 }
 0x19e   : > { %1196 = vmatpush.bf16.msrb.mxu0 %v1816_v4  ;;  %v1039_v4 = vld [vmem:[%s2945_s0] sm:$0xff] }
 0x19f   : > { %1209 = vmatpush.bf16.msrb.mxu1 %v1820_v26 }
 0x1a2   : > { %1197 = vmatpush.bf16.msrb.mxu0 %v1804_v9 }
 0x1a3   : > { %1210 = vmatpush.bf16.msrb.mxu1 %v1808_v5 }
 0x1a6   : > { %1198 = vmatpush.bf16.msrb.mxu0 %v1792_v11 }
 0x1a7   : > { %1211 = vmatpush.bf16.msrb.mxu1 %v1796_v20 }
 0x1a9   : > { %1199 = vmatmul.bf16.vlgmr.msrb.gmra.mxu0 %v1042_v0 }
 0x1aa   : > { %1212 = vmatmul.bf16.vlgmr.msrb.gmra.mxu1 %v1042_v0  ;;  %v3144_v0 = vld [vmem:[#allocation95_spill] sm:$0xff] }
 0x1ab   : > { %v1044_v10 = vperm.slane %v3144_v0, 0 }
 0x206   : > { %v959_v50 = vpop.f32.mrf.mxu0 }
 0x207   : > { %v960_v23 = vadd.f32 %v959_v50, %v816_v3  ;;  %v972_v60 = vpop.f32.mrf.mxu1  ;;  %v818_v50 = vperm.slane %v3143_v52, 2 }
 0x208   : > { %v973_v56 = vadd.f32 %v972_v60, %v817_v8 }
 0x209   : > { %v989_v54 = vadd.f32 %v960_v23, %v811_v15 }
 0x20a   : > { %v1009_v62 = vadd.f32 %v973_v56, %v812_v53 }
 0x20b   : > { %v1782_v1 = vmul.f32 -1.442695, %v989_v54 }
 0x20c   : > { %v1187_v7 = vpop.f32.mrf.mxu3  ;;  %v1783_v6 = vmul.f32 -1.442695, %v1009_v62  ;;  %v1045_v62 = vperm.slane %v3144_v0, 1 }
 0x20d   : > { %2125 = vpow2.f32 %v1782_v1  ;;  %v1188_v26 = vadd.f32 %v1187_v7, %v1044_v10 }
 0x20e   : > { %2127 = vpow2.f32 %v1783_v6  ;;  %v961_v29 = vpop.f32.mrf.mxu0  ;;  %v985_v17 = vpop.f32.mrf.mxu2 }
 0x20f   : > { %v1217_v2 = vadd.f32 %v1188_v26, %v1039_v4  ;;  %v974_v9 = vpop.f32.mrf.mxu1  ;;  %v986_v1 = vadd.f32 %v985_v17, %v818_v50 }
 0x210   : > { %v1040_v9 = vld [vmem:[%s2945_s0 + $0x8] sm:$0xff] }
 0x211   : > { %v1881_v14 = vmul.f32 -1.442695, %v1217_v2 }
 0x213   : > { %v2126_v5 = vpop.eup %2125  ;;  %2129 = vpow2.f32 %v1881_v14 }
 0x214   : > { %v2128_v18 = vpop.eup %2127  ;;  %v993_v21 = vadd.f32 1.0, %v2126_v5  ;;  %v1189_v11 = vpop.f32.mrf.mxu3 }
 0x215   : > { %v1013_v16 = vadd.f32 1.0, %v2128_v18 }
 0x216   : > { %2131 = vrcp.f32 %v993_v21  ;;  %v987_v3 = vpop.f32.mrf.mxu2  ;;  %v1005_v60 = vand.u32 2147483648, %v993_v21  ;;  %vm999_vm0 = vweird.f32 %v993_v21  ;;  %v1003_v54 = vand.u32 2147483647, %v993_v21 }
 0x217   : > { %2133 = vrcp.f32 %v1013_v16  ;;  %vm1019_vm2 = vweird.f32 %v1013_v16  ;;  %v1025_v2 = vand.u32 2147483648, %v1013_v16  ;;  %v1023_v11 = vand.u32 2147483647, %v1013_v16 }
 0x218   : > { %v1006_v29 = vor.u32 1.1754944e-38, %v1005_v60  ;;  %vm1004_vm5 = vcmp.eq.f32.partialorder %v1003_v54, 8.507059e+37 }
 0x219   : > { %v2130_v12 = vpop.eup %2129  ;;  %v1026_v60 = vor.u32 1.1754944e-38, %v1025_v2  ;;  %vm1024_vm7 = vcmp.eq.f32.partialorder %v1023_v11, 8.507059e+37 }
 0x21a   : > { %v2948_v20 = vadd.f32 1.0, %v2130_v12 }
 0x21c   : > { %v2132_v8 = vpop.eup %2131  ;;  %2135 = vrcp.f32 %v2948_v20  ;;  %vm1227_vm8 = vweird.f32 %v2948_v20 }
 0x21d   : > { %v2134_v15 = vpop.eup %2133  ;;  %v995_v23 = vmul.f32 %v2132_v8, %v993_v21  ;;  %vm1000_vm1 = vweird.f32 %v2132_v8 }
 0x21e   : > { %v1015_v53 = vmul.f32 %v2134_v15, %v1013_v16  ;;  %vm1020_vm3 = vweird.f32 %v2134_v15  ;;  %vm2953_vm4 = vmor %vm999_vm0, %vm1000_vm1 }
 0x21f   : > { %v996_v56 = vsub.f32 1.0, %v995_v23  ;;  %vm1021_vm6 = vmor %vm1019_vm2, %vm1020_vm3 }
 0x220   : > { %v1016_v10 = vsub.f32 1.0, %v1015_v53  ;;  %v813_v53 = vld [vmem:[%s2940_s26 + $0x10] sm:$0xff] }
 0x221   : > { %v997_v4 = vmul.f32 %v2132_v8, %v996_v56 }
 0x222   : > { %v2136_v7 = vpop.eup %2135  ;;  %v1017_v6 = vmul.f32 %v2134_v15, %v1016_v10 }
 0x223   : > { %v998_v5 = vadd.f32 %v2132_v8, %v997_v4  ;;  %v1223_v18 = vmul.f32 %v2136_v7, %v2948_v20  ;;  %vm1228_vm9 = vweird.f32 %v2136_v7 }
 0x224   : > { %v1018_v17 = vadd.f32 %v2134_v15, %v1017_v6  ;;  %vm1229_vm10 = vmor %vm1227_vm8, %vm1228_vm9 }
 0x225   : > { %v1002_v3 = vsel %vm2953_vm4, %v2132_v8, %v998_v5  ;;  %v1224_v50 = vsub.f32 1.0, %v1223_v18  ;;  %v1233_v8 = vand.u32 2147483648, %v2948_v20 }
 0x226   : > { %v1200_v14 = vpop.f32.mrf.mxu0  ;;  %v1007_v56 = vsel %vm1004_vm5, %v1006_v29, %v1002_v3  ;;  %v1022_v22 = vsel %vm1021_vm6, %v2134_v15, %v1018_v17  ;;  %v1231_v29 = vand.u32 2147483647, %v2948_v20  ;;  %v1046_v15 = vperm.slane %v3144_v0, 2  ;;  %v1041_v3 = vld [vmem:[%s2945_s0 + $0x10] sm:$0xff] }
 0x227   : > { %v1201_v21 = vadd.f32 %v1200_v14, %v1045_v62  ;;  %v1213_v12 = vpop.f32.mrf.mxu1  ;;  %v1029_v10 = vmul.f32 %v1007_v56, %v986_v1  ;;  %v1225_v4 = vmul.f32 %v2136_v7, %v1224_v50  ;;  %v1027_v62 = vsel %vm1024_vm7, %v1026_v60, %v1022_v22 }
 0x228   : > { %v1032_v1 = vsub.f32 1.0, %v1027_v62  ;;  %v1234_v22 = vor.u32 1.1754944e-38, %v1233_v8  ;;  %vm1232_vm11 = vcmp.eq.f32.partialorder %v1231_v29, 8.507059e+37  ;;  %v2066_v29 = vld [vmem:[#allocation16 + $0x78] sm:$0xff] (%p801_p0) }
 0x229   : > { %v1237_v23 = vadd.f32 %v1201_v21, %v1040_v9  ;;  %v1030_v54 = vadd.f32 %v1029_v10, %v813_v53  ;;  %v1226_v26 = vadd.f32 %v2136_v7, %v1225_v4  ;;  %v1214_v21 = vadd.f32 %v1213_v12, %v1046_v15  ;;  %1354 = vmatpush.bf16.msra.mxu0 (%p801_p0), %v2066_v29  ;;  %v2065_v15 = vld [vmem:[#allocation16 + $0x70] sm:$0xff] (%p801_p0) }
 0x22b   : > { %v1882_v19 = vmul.f32 -1.442695, %v1237_v23  ;;  %v1230_v5 = vsel %vm1229_vm10, %v2136_v7, %v1226_v26 }
 0x22c   : > { %v1235_v20 = vsel %vm1232_vm11, %v1234_v22, %v1230_v5  ;;  %v2056_v22 = vld [vmem:[#allocation16 + $0x28] sm:$0xff] (%p801_p0)  ;;  %v2062_v5 = vld [vmem:[#allocation16 + $0x58] sm:$0xff] (%p801_p0) }
 0x22d   : > { %2137 = vpow2.f32 %v1882_v19  ;;  %v1034_v19 = vmul.f32 %v2420_v13, %v1027_v62  ;;  %v1257_v11 = vmul.f32 %v1235_v20, %v1214_v21  ;;  %1355 = vmatpush.bf16.msra.mxu0 (%p801_p0), %v2065_v15 }
 0x22e   : > { %2139 = vtanh.f32 %v1030_v54  ;;  %v1202_v16 = vpop.f32.mrf.mxu0 }
 0x22f   : > { %v1215_v6 = vpop.f32.mrf.mxu1  ;;  %v1258_v53 = vadd.f32 %v1257_v11, %v1041_v3 }
 0x233   : > { %v2138_v2 = vpop.eup %2137 }
 0x234   : > { %v2140_v9 = vpop.eup %2139  ;;  %v1241_v14 = vadd.f32 1.0, %v2138_v2  ;;  %v2057_v2 = vld [vmem:[#allocation16 + $0x30] sm:$0xff] (%p801_p0) }
 0x235   : > { %v1033_v18 = vmul.f32 %v2140_v9, %v1032_v1  ;;  %v2058_v1 = vld [vmem:[#allocation16 + $0x38] sm:$0xff] (%p801_p0)  ;;  %v2063_v9 = vld [vmem:[#allocation16 + $0x60] sm:$0xff] (%p801_p0) }
 0x236   : > { %2141 = vrcp.f32 %v1241_v14  ;;  %v1253_v60 = vand.u32 2147483648, %v1241_v14  ;;  %v1251_v7 = vand.u32 2147483647, %v1241_v14  ;;  %vm1247_vm13 = vweird.f32 %v1241_v14  ;;  %1415 = vmatpush.bf16.msra.mxu1 (%p801_p0), %v2058_v1 }
 0x237   : > { %v2968_v13 = vadd.f32 %v1034_v19, %v1033_v18   ;;  %2143 = vtanh.f32 %v1258_v53  ;;  %v2064_v19 = vld [vmem:[#allocation16 + $0x68] sm:$0xff] (%p801_p0)  ;;  %v2054_v18 = vld [vmem:[#allocation16 + $0x18] sm:$0xff] (%p801_p0) }
 0x238   : > { %vm1252_vm15 = vcmp.eq.f32.partialorder %v1251_v7, 8.507059e+37  ;;  %1356 = vmatpush.bf16.msra.mxu0 (%p801_p0), %v2064_v19 }
 0x239   : > { %v3147_v17 = vmov %v2968_v13  ;;  %v1254_v13 = vor.u32 1.1754944e-38, %v1253_v60 }
 0x23a   : > { %1267 = vst [vmem:[%s1266_s28] sm:$0xff] %v3147_v17  ;;  %1416 = vmatpush.bf16.msra.mxu1 (%p801_p0), %v2057_v2  ;;  %v1304_v33 = vpack.c.bf16 (%p801_p0), %v3147_v17, %v3147_v17 }
 0x23c   : > { %v2142_v50 = vpop.eup %2141  ;;  %1357 = vmatpush.bf16.msra.mxu0 (%p801_p0), %v2063_v9 }
 0x23d   : > { %v1243_v23 = vmul.f32 %v2142_v50, %v1241_v14  ;;  %vm1248_vm12 = vweird.f32 %v2142_v50  ;;  %v2144_v16 = vpop.eup %2143  ;;  %v2055_v14 = vld [vmem:[#allocation16 + $0x20] sm:$0xff] (%p801_p0) }
 0x23e   : > { %vm1249_vm14 = vmor %vm1247_vm13, %vm1248_vm12  ;;  %1417 = vmatpush.bf16.msra.mxu1 (%p801_p0), %v2056_v22 }
 0x23f   : > { %v1244_v56 = vsub.f32 1.0, %v1243_v23 }
 0x240   :  { %1358 = vmatpush.bf16.msra.mxu0 (%p801_p0), %v2062_v5 }
 0x241   : > { %v1245_v10 = vmul.f32 %v2142_v50, %v1244_v56 }
 0x242   :  { %1418 = vmatpush.bf16.msra.mxu1 (%p801_p0), %v2055_v14 }
 0x243   : > { %v1246_v12 = vadd.f32 %v2142_v50, %v1245_v10 }
 0x244   :  { %1359 = vmatpush.bf16.msra.mxu0 (%p801_p0), %v2061_v24 }
 0x245   : > { %v1250_v54 = vsel %vm1249_vm14, %v2142_v50, %v1246_v12 }
 0x246   : > { %v1255_v4 = vsel %vm1252_vm15, %v1254_v13, %v1250_v54  ;;  %v3149_v13 = vmov %v3147_v17  ;;  %1419 = vmatpush.bf16.msra.mxu1 (%p801_p0), %v2054_v18 }
 0x247   : > { %v1260_v62 = vsub.f32 1.0, %v1255_v4  ;;  %v1262_v6 = vmul.f32 %v2416_v59, %v1255_v4 }
 0x248   :  { %1360 = vmatpush.bf16.msra.mxu0 (%p801_p0), %v2060_v27 }
 0x249   : > { %v1261_v8 = vmul.f32 %v2144_v16, %v1260_v62  ;;  %803 = sbr.rel (!%p801_p0) target bundleno = 360 (0x168), region = 115 }
 0x24a   :  { %1420 = vmatpush.bf16.msra.mxu1 (%p801_p0), %v2053_v25 }
 0x24b   : > { %v1263_v26 = vadd.f32 %v1262_v6, %v1261_v8  }
 0x24c   :  { %1361 = vmatpush.bf16.msra.mxu0 (%p801_p0), %v2059_v30 }
 0x24d   : > { %1271 = vst [vmem:[%s1270_s14 + $0x8] sm:$0xff] %v1263_v26  ;;  %v3148_v59 = vmov %v1263_v26  ;;  %v1305_v32 = vpack.c.bf16 (%p801_p0), %v1263_v26, %v1263_v26 }
 0x24e   :  { %1421 = vmatpush.bf16.msra.mxu1 %v2052_v28  ;;  %1447 = dma.vmem_to_hbm [thread:$0]  %s1440_s1, 2048, %s1442_s18, [#allocation6], %s2441_s2, %s2441_s2, %s2442_s3  }
 0x24f   :  { %1362 = vmatmul.bf16.vlgmr.msra.gmra.mxu0 %v1305_v32 }
 0x252   :  { %1422 = vmatpush.bf16.msra.mxu1 %v2051_v31 }
 0x255   :  { %1423 = vmatmul.bf16.vlgmr.msra.gmra.mxu1 %v1304_v33 }
 0x2cc   :  { %v1363_v35 = vpop.f32.mrf.mxu0 }
 0x2d2   :  { %v1424_v36 = vpop.f32.mrf.mxu1 }
 0x2d3   :  { %v1425_v37 = vadd.f32 %v1424_v36, %v1363_v35 }
 0x2d4   :  { %v1365_v39 = vpop.f32.mrf.mxu0 }
 0x2d5   :  { %v1432_v38 = vadd.f32 %v2145_v34, %v1425_v37 }
 0x2d7   :  { %2146 = vtanh.f32 %v1432_v38 }
 0x2da   :  { %v1426_v40 = vpop.f32.mrf.mxu1 }
 0x2dd   :  { %v2147_v41 = vpop.eup %2146 }
 0x2de   :  { %1434 = vst [vmem:[#allocation19] sm:$0xff] %v2147_v41 }
 0x2df   :  { %1458 = dma.vmem_to_hbm [thread:$0]  %s1454_s21, 128, %s1456_s11, [#allocation20]  }
 0x2e0   :  { %2410 = dma.done.wait [#allocation6], 2048  }
 0x2e1   :  { %2411 = vsyncadd [#allocation6], 4294965248 }
 0x2e2   :  { %2412 = dma.done.wait [#allocation20], 128  }
 0x2e3   :  { %2413 = vsyncadd [#allocation20], 4294967168 }
 0x2e4   :  { %1467 = vsyncpa [#allocation5], 1 }
 0x2e5   :  { %1468 = vsyncpa [#allocation8], 1 }
 0x2e6   :  { %1469 = vsyncpa [#allocation11], 1 }
 0x2e7   :  { %1470 = vsyncpa [#allocation14], 1 }
 0x2e8   :  { %1471 = vsyncpa [#allocation17], 1 }
 0x2e9   :  { %1472 = vsyncpa [#allocation6], 1 }
 0x2ea   :  { %1473 = vsyncpa [#allocation20], 1 }

</bundles_post_ra>
